<compile_context>
chip_gen: v6e
topology: v6e:2x2x1
jax: 0.10.0
libtpu: 0.0.40
codegen_flags: <defaults>
</compile_context>

<pallas_src>
import functools

import jax
import jax.numpy as jnp
import numpy as np
from jax.experimental import pallas as pl
from jax.experimental.pallas import tpu as pltpu


# ----------------------------------------------------------------------------
# Single fused kernel: MLP -> gate projection -> LSTM recurrence -> head.
# ----------------------------------------------------------------------------
def _fused_forward_kernel(
    obs_ref, act_ref, rew_ref, h0_ref, c0_ref,
    mw1_ref, mb1_ref, mw2_ref, mb2_ref,
    wgx_ref, wga_ref, wgr_ref, whh_ref, bg_ref,
    hw1_ref, hb1_ref, hw2_ref, hb2_ref,
    q_ref, hn_ref, cn_ref,
    seq_sc,
    *, T, Bp, H):
    f32 = jnp.float32

    # ---- MLP: Linear -> tanh -> Linear, all T*Bp rows at once ----
    h1 = jnp.tanh(
        jnp.dot(obs_ref[...], mw1_ref[...], preferred_element_type=f32)
        + mb1_ref[...])
    mlp_out = jnp.dot(h1, mw2_ref[...], preferred_element_type=f32) + mb2_ref[...]

    # ---- Input-side LSTM gate pre-activations for the whole sequence ----
    # (mlp_out | prev_action | prev_reward) @ W_ih + b, without a concatenate:
    # two MXU dots for the wide parts; the K=1 reward column is a VPU
    # broadcast-multiply.
    gx = (jnp.dot(mlp_out, wgx_ref[...], preferred_element_type=f32)
          + jnp.dot(act_ref[...], wga_ref[...], preferred_element_type=f32)
          + rew_ref[...] * wgr_ref[...]
          + bg_ref[...])                              # [T*Bp, 4H]

    whh = whh_ref[...]
    h = h0_ref[...]
    c = c0_ref[...]

    # ---- Recurrence: statically unrolled over T (static slices only) ----
    for t in range(T):
        gates = gx[t * Bp:(t + 1) * Bp, :] + jnp.dot(
            h, whh, preferred_element_type=f32)        # [Bp, 4H]
        # Gate columns were permuted at init to [i, f, o, g]:
        sig = jax.nn.sigmoid(gates[:, :3 * H])
        i_g = sig[:, 0 * H:1 * H]
        f_g = sig[:, 1 * H:2 * H]
        o_g = sig[:, 2 * H:3 * H]
        g_g = jnp.tanh(gates[:, 3 * H:])
        c = f_g * c + i_g * g_g
        h = o_g * jnp.tanh(c)
        seq_sc[t * Bp:(t + 1) * Bp, :] = h

    # Final recurrent state written exactly once.
    hn_ref[...] = h
    cn_ref[...] = c

    # ---- Head: Linear -> ReLU -> Linear (lane-padded, dense Q store) ----
    z = jnp.maximum(
        jnp.dot(seq_sc[...], hw1_ref[...], preferred_element_type=f32)
        + hb1_ref[...],
        0.0)
    q_ref[...] = jnp.dot(z, hw2_ref[...], preferred_element_type=f32) + hb2_ref[...]


def _fs(shape):
    # Full-array block (grid=(1,)): loaded into VMEM exactly once.
    n = len(shape)
    return pl.BlockSpec(shape, lambda i, _n=n: (0,) * _n)


def fused_forward(obs_flat, act_flat, rew_flat, h0, c0, kp, *, T, Bp, H, q_pad):
    n = T * Bp
    kern = functools.partial(_fused_forward_kernel, T=T, Bp=Bp, H=H)
    inputs = (obs_flat, act_flat, rew_flat, h0, c0,
              kp["mw1"], kp["mb1"], kp["mw2"], kp["mb2"],
              kp["wgx"], kp["wga"], kp["wgr"], kp["whh"], kp["bg"],
              kp["hw1"], kp["hb1"], kp["hw2"], kp["hb2"])
    return pl.pallas_call(
        kern,
        grid=(1,),
        out_shape=(
            jax.ShapeDtypeStruct((n, q_pad), jnp.float32),
            jax.ShapeDtypeStruct((Bp, H), jnp.float32),
            jax.ShapeDtypeStruct((Bp, H), jnp.float32),
        ),
        in_specs=[_fs(x.shape) for x in inputs],
        out_specs=(
            _fs((n, q_pad)),
            _fs((Bp, H)),
            _fs((Bp, H)),
        ),
        scratch_shapes=[
            pltpu.VMEM((n, H), jnp.float32),       # lstm hidden sequence
        ],
        compiler_params=pltpu.CompilerParams(
            dimension_semantics=("arbitrary",),
            vmem_limit_bytes=64 * 1024 * 1024),
    )(*inputs)


# ----------------------------------------------------------------------------
# Model: parameter construction + forward glue.
# ----------------------------------------------------------------------------
class DeepdriveR2d1ModelPallas:
    def __init__(self, observation_shape, output_size, fc_size=32, lstm_size=32,
                 head_size=32, mlp_hidden=256, key=None):
        self.obs_dim = int(np.prod(observation_shape))
        self.output_size = output_size
        self.fc_size = fc_size
        self.lstm_size = lstm_size
        self.head_size = head_size
        self.mlp_hidden = mlp_hidden
        if key is None:
            key = jax.random.PRNGKey(0)
        ks = jax.random.split(key, 10)

        def init(k, shape, fan_in):
            return jax.random.normal(k, shape, jnp.float32) / np.sqrt(fan_in)

        D, M, F, H, P, O = (self.obs_dim, mlp_hidden, fc_size, lstm_size,
                            head_size, output_size)
        lstm_in = F + O + 1

        # Torch-convention parameters (used by the pure-JAX reference).
        self.mlp_w1 = init(ks[0], (D, M), D)
        self.mlp_b1 = jnp.zeros((M,), jnp.float32)
        self.mlp_w2 = init(ks[1], (M, F), M)
        self.mlp_b2 = jnp.zeros((F,), jnp.float32)
        # LSTM stored pre-transposed: [in, 4H] / [H, 4H]; bias = b_ih + b_hh.
        self.lstm_wih = init(ks[2], (lstm_in, 4 * H), lstm_in)
        self.lstm_whh = init(ks[3], (H, 4 * H), H)
        self.lstm_b = 0.1 * jax.random.normal(ks[4], (4 * H,), jnp.float32)
        self.head_w1 = init(ks[5], (H, P), H)
        self.head_b1 = jnp.zeros((P,), jnp.float32)
        self.head_w2 = init(ks[6], (P, O), P)
        self.head_b2 = jnp.zeros((O,), jnp.float32)

        # ---- Kernel-layout parameters (precomputed once) ----
        # Gate columns permuted torch [i,f,g,o] -> [i,f,o,g] so the kernel does
        # one contiguous sigmoid slice and one contiguous tanh slice.
        perm = np.concatenate([np.arange(0, 2 * H), np.arange(3 * H, 4 * H),
                               np.arange(2 * H, 3 * H)])
        wih_p = self.lstm_wih[:, perm]
        whh_p = self.lstm_whh[:, perm]
        b_p = self.lstm_b[perm]
        # Lane-dense Q output: pad head output columns to a multiple of 128.
        self.q_lane_pad = max(128, ((O + 127) // 128) * 128)
        hw2p = jnp.zeros((P, self.q_lane_pad), jnp.float32).at[:, :O].set(self.head_w2)
        hb2p = jnp.zeros((1, self.q_lane_pad), jnp.float32).at[:, :O].set(
            self.head_b2.reshape(1, O))
        self.kparams = dict(
            mw1=self.mlp_w1, mb1=self.mlp_b1.reshape(1, M),
            mw2=self.mlp_w2, mb2=self.mlp_b2.reshape(1, F),
            wgx=wih_p[:F, :],             # mlp_out   -> gates (MXU)
            wga=wih_p[F:F + O, :],        # prev_act  -> gates (MXU)
            wgr=wih_p[F + O:, :],         # prev_rew  -> gates (VPU rank-1)
            whh=whh_p, bg=b_p.reshape(1, 4 * H),
            hw1=self.head_w1, hb1=self.head_b1.reshape(1, P),
            hw2=hw2p, hb2=hb2p,
        )

    def forward(self, observation, prev_action, prev_reward, init_rnn_state):
        T, B = observation.shape[0], observation.shape[1]
        Bp = ((B + 7) // 8) * 8          # full-sublane batch
        pad = Bp - B
        f32 = jnp.float32

        obs = observation.astype(f32).reshape(T, B, -1)
        act = prev_action.astype(f32).reshape(T, B, -1)
        rew = prev_reward.astype(f32).reshape(T, B, 1)
        h0, c0 = init_rnn_state          # each [1, B, H] (torch nn.LSTM convention)
        h0 = h0[0].astype(f32)
        c0 = c0[0].astype(f32)
        if pad:
            pad3 = lambda x: jnp.pad(x, ((0, 0), (0, pad), (0, 0)))
            obs, act, rew = pad3(obs), pad3(act), pad3(rew)
            h0 = jnp.pad(h0, ((0, pad), (0, 0)))
            c0 = jnp.pad(c0, ((0, pad), (0, 0)))

        q_full, hn_p, cn_p = fused_forward(
            obs.reshape(T * Bp, -1),
            act.reshape(T * Bp, -1),
            rew.reshape(T * Bp, 1),
            h0, c0, self.kparams,
            T=T, Bp=Bp, H=self.lstm_size, q_pad=self.q_lane_pad)

        q = q_full.reshape(T, Bp, self.q_lane_pad)[:, :B, :self.output_size]
        hn = hn_p[:B][None]
        cn = cn_p[:B][None]
        return q, (hn, cn)

    # Pure-JAX reference for correctness checking (torch gate order, no padding).
    def forward_ref(self, observation, prev_action, prev_reward, init_rnn_state):
        T, B = observation.shape[0], observation.shape[1]
        x = observation.astype(jnp.float32).reshape(T * B, -1)
        h = jnp.tanh(x @ self.mlp_w1 + self.mlp_b1)
        mlp_out = h @ self.mlp_w2 + self.mlp_b2
        lstm_input = jnp.concatenate(
            [mlp_out.reshape(T, B, -1),
             prev_action.astype(jnp.float32).reshape(T, B, -1),
             prev_reward.astype(jnp.float32).reshape(T, B, 1)], axis=2)
        H = self.lstm_size
        h_t, c_t = init_rnn_state[0][0], init_rnn_state[1][0]
        outs = []
        for t in range(T):
            gates = lstm_input[t] @ self.lstm_wih + h_t @ self.lstm_whh + self.lstm_b
            i_g = jax.nn.sigmoid(gates[:, 0 * H:1 * H])
            f_g = jax.nn.sigmoid(gates[:, 1 * H:2 * H])
            g_g = jnp.tanh(gates[:, 2 * H:3 * H])
            o_g = jax.nn.sigmoid(gates[:, 3 * H:4 * H])
            c_t = f_g * c_t + i_g * g_g
            h_t = o_g * jnp.tanh(c_t)
            outs.append(h_t)
        lstm_out = jnp.stack(outs, axis=0)
        z = jnp.maximum(lstm_out.reshape(T * B, -1) @ self.head_w1 + self.head_b1, 0.0)
        q = (z @ self.head_w2 + self.head_b2).reshape(T, B, self.output_size)
        return q, (h_t[None], c_t[None])


if __name__ == "__main__":
    T, B = 8, 2
    obs_dim, output_size = 16, 4
    fc_size = lstm_size = head_size = 32

    key = jax.random.PRNGKey(0)
    k_obs, k_act, k_rew, k_h, k_c, k_params = jax.random.split(key, 6)

    observation = jax.random.normal(k_obs, (T, B, obs_dim), jnp.float32)
    act_idx = jax.random.randint(k_act, (T, B), 0, output_size)
    prev_action = jax.nn.one_hot(act_idx, output_size, dtype=jnp.float32)
    prev_reward = jax.random.normal(k_rew, (T, B), jnp.float32)
    h0 = jax.random.normal(k_h, (1, B, lstm_size), jnp.float32) * 0.1
    c0 = jax.random.normal(k_c, (1, B, lstm_size), jnp.float32) * 0.1

    model = DeepdriveR2d1ModelPallas((obs_dim,), output_size,
                                     fc_size=fc_size, lstm_size=lstm_size,
                                     head_size=head_size, mlp_hidden=256,
                                     key=k_params)

    q, (hn, cn) = model.forward(observation, prev_action, prev_reward, (h0, c0))
    jax.block_until_ready((q, hn, cn))

    q_ref, (hn_ref, cn_ref) = model.forward_ref(
        observation, prev_action, prev_reward, (h0, c0))

    assert q.shape == (T, B, output_size)
    assert hn.shape == (1, B, lstm_size) and cn.shape == (1, B, lstm_size)
    np.testing.assert_allclose(np.asarray(q), np.asarray(q_ref), rtol=1e-2, atol=1e-2)
    np.testing.assert_allclose(np.asarray(hn), np.asarray(hn_ref), rtol=1e-2, atol=1e-2)
    np.testing.assert_allclose(np.asarray(cn), np.asarray(cn_ref), rtol=1e-2, atol=1e-2)

    print("KERNEL_OK")
</pallas_src>

<mosaic_0001>
module attributes {stable_mosaic.version = 11 : i64} {
  func.func @_fused_forward_kernel(%arg0: i32, %arg1: memref<64x16xf32, #tpu.memory_space<vmem>>, %arg2: memref<64x4xf32, #tpu.memory_space<vmem>>, %arg3: memref<64x1xf32, #tpu.memory_space<vmem>>, %arg4: memref<8x32xf32, #tpu.memory_space<vmem>>, %arg5: memref<8x32xf32, #tpu.memory_space<vmem>>, %arg6: memref<16x256xf32, #tpu.memory_space<vmem>>, %arg7: memref<1x256xf32, #tpu.memory_space<vmem>>, %arg8: memref<256x32xf32, #tpu.memory_space<vmem>>, %arg9: memref<1x32xf32, #tpu.memory_space<vmem>>, %arg10: memref<32x128xf32, #tpu.memory_space<vmem>>, %arg11: memref<4x128xf32, #tpu.memory_space<vmem>>, %arg12: memref<1x128xf32, #tpu.memory_space<vmem>>, %arg13: memref<32x128xf32, #tpu.memory_space<vmem>>, %arg14: memref<1x128xf32, #tpu.memory_space<vmem>>, %arg15: memref<32x32xf32, #tpu.memory_space<vmem>>, %arg16: memref<1x32xf32, #tpu.memory_space<vmem>>, %arg17: memref<32x128xf32, #tpu.memory_space<vmem>>, %arg18: memref<1x128xf32, #tpu.memory_space<vmem>>, %arg19: memref<64x128xf32, #tpu.memory_space<vmem>>, %arg20: memref<8x32xf32, #tpu.memory_space<vmem>>, %arg21: memref<8x32xf32, #tpu.memory_space<vmem>>, %arg22: memref<64x32xf32, #tpu.memory_space<vmem>>) attributes {dimension_semantics = [#tpu.dimension_semantics<arbitrary>], iteration_bounds = array<i64: 1>, scalar_prefetch = 0 : i64, scratch_operands = 1 : i64, tpu.core_type = #tpu.core_type<tc>, window_params = [{pipeline_mode = #tpu.pipeline_mode<synchronous>, transform_indices = @transform_0, window_bounds = array<i64: 64, 16>}, {pipeline_mode = #tpu.pipeline_mode<synchronous>, transform_indices = @transform_1, window_bounds = array<i64: 64, 4>}, {pipeline_mode = #tpu.pipeline_mode<synchronous>, transform_indices = @transform_2, window_bounds = array<i64: 64, 1>}, {pipeline_mode = #tpu.pipeline_mode<synchronous>, transform_indices = @transform_3, window_bounds = array<i64: 8, 32>}, {pipeline_mode = #tpu.pipeline_mode<synchronous>, transform_indices = @transform_4, window_bounds = array<i64: 8, 32>}, {pipeline_mode = #tpu.pipeline_mode<synchronous>, transform_indices = @transform_5, window_bounds = array<i64: 16, 256>}, {pipeline_mode = #tpu.pipeline_mode<synchronous>, transform_indices = @transform_6, window_bounds = array<i64: 1, 256>}, {pipeline_mode = #tpu.pipeline_mode<synchronous>, transform_indices = @transform_7, window_bounds = array<i64: 256, 32>}, {pipeline_mode = #tpu.pipeline_mode<synchronous>, transform_indices = @transform_8, window_bounds = array<i64: 1, 32>}, {pipeline_mode = #tpu.pipeline_mode<synchronous>, transform_indices = @transform_9, window_bounds = array<i64: 32, 128>}, {pipeline_mode = #tpu.pipeline_mode<synchronous>, transform_indices = @transform_10, window_bounds = array<i64: 4, 128>}, {pipeline_mode = #tpu.pipeline_mode<synchronous>, transform_indices = @transform_11, window_bounds = array<i64: 1, 128>}, {pipeline_mode = #tpu.pipeline_mode<synchronous>, transform_indices = @transform_12, window_bounds = array<i64: 32, 128>}, {pipeline_mode = #tpu.pipeline_mode<synchronous>, transform_indices = @transform_13, window_bounds = array<i64: 1, 128>}, {pipeline_mode = #tpu.pipeline_mode<synchronous>, transform_indices = @transform_14, window_bounds = array<i64: 32, 32>}, {pipeline_mode = #tpu.pipeline_mode<synchronous>, transform_indices = @transform_15, window_bounds = array<i64: 1, 32>}, {pipeline_mode = #tpu.pipeline_mode<synchronous>, transform_indices = @transform_16, window_bounds = array<i64: 32, 128>}, {pipeline_mode = #tpu.pipeline_mode<synchronous>, transform_indices = @transform_17, window_bounds = array<i64: 1, 128>}, {pipeline_mode = #tpu.pipeline_mode<synchronous>, transform_indices = @transform_18, window_bounds = array<i64: 64, 128>}, {pipeline_mode = #tpu.pipeline_mode<synchronous>, transform_indices = @transform_19, window_bounds = array<i64: 8, 32>}, {pipeline_mode = #tpu.pipeline_mode<synchronous>, transform_indices = @transform_20, window_bounds = array<i64: 8, 32>}]} {
    %c0 = arith.constant 0 : index
    %c0_0 = arith.constant 0 : index
    %0 = vector.load %arg1[%c0, %c0_0] : memref<64x16xf32, #tpu.memory_space<vmem>>, vector<64x16xf32>
    %c0_1 = arith.constant 0 : index
    %c0_2 = arith.constant 0 : index
    %1 = vector.load %arg6[%c0_1, %c0_2] : memref<16x256xf32, #tpu.memory_space<vmem>>, vector<16x256xf32>
    %cst = arith.constant dense<0.000000e+00> : vector<64x256xf32>
    %2 = tpu.matmul %0, %1, %cst {dimension_numbers = #tpu.dot_dimension_numbers<[1], [0], [0], [1], [0, 0, 1, 1], [], []>} : vector<64x16xf32>, vector<16x256xf32>, vector<64x256xf32> -> vector<64x256xf32>
    %c0_3 = arith.constant 0 : index
    %c0_4 = arith.constant 0 : index
    %3 = vector.load %arg7[%c0_3, %c0_4] : memref<1x256xf32, #tpu.memory_space<vmem>>, vector<1x256xf32>
    %4 = vector.broadcast %3 : vector<1x256xf32> to vector<64x256xf32>
    %5 = arith.addf %2, %4 : vector<64x256xf32>
    %6 = math.tanh %5 : vector<64x256xf32>
    %c0_5 = arith.constant 0 : index
    %c0_6 = arith.constant 0 : index
    %7 = vector.load %arg8[%c0_5, %c0_6] : memref<256x32xf32, #tpu.memory_space<vmem>>, vector<256x32xf32>
    %cst_7 = arith.constant dense<0.000000e+00> : vector<64x32xf32>
    %8 = tpu.matmul %6, %7, %cst_7 {dimension_numbers = #tpu.dot_dimension_numbers<[1], [0], [0], [1], [0, 0, 1, 1], [], []>} : vector<64x256xf32>, vector<256x32xf32>, vector<64x32xf32> -> vector<64x32xf32>
    %c0_8 = arith.constant 0 : index
    %c0_9 = arith.constant 0 : index
    %9 = vector.load %arg9[%c0_8, %c0_9] : memref<1x32xf32, #tpu.memory_space<vmem>>, vector<1x32xf32>
    %10 = vector.broadcast %9 : vector<1x32xf32> to vector<64x32xf32>
    %11 = arith.addf %8, %10 : vector<64x32xf32>
    %c0_10 = arith.constant 0 : index
    %c0_11 = arith.constant 0 : index
    %12 = vector.load %arg10[%c0_10, %c0_11] : memref<32x128xf32, #tpu.memory_space<vmem>>, vector<32x128xf32>
    %cst_12 = arith.constant dense<0.000000e+00> : vector<64x128xf32>
    %13 = tpu.matmul %11, %12, %cst_12 {dimension_numbers = #tpu.dot_dimension_numbers<[1], [0], [0], [1], [0, 0, 1, 1], [], []>} : vector<64x32xf32>, vector<32x128xf32>, vector<64x128xf32> -> vector<64x128xf32>
    %c0_13 = arith.constant 0 : index
    %c0_14 = arith.constant 0 : index
    %14 = vector.load %arg2[%c0_13, %c0_14] : memref<64x4xf32, #tpu.memory_space<vmem>>, vector<64x4xf32>
    %c0_15 = arith.constant 0 : index
    %c0_16 = arith.constant 0 : index
    %15 = vector.load %arg11[%c0_15, %c0_16] : memref<4x128xf32, #tpu.memory_space<vmem>>, vector<4x128xf32>
    %cst_17 = arith.constant dense<0.000000e+00> : vector<64x128xf32>
    %16 = tpu.matmul %14, %15, %cst_17 {dimension_numbers = #tpu.dot_dimension_numbers<[1], [0], [0], [1], [0, 0, 1, 1], [], []>} : vector<64x4xf32>, vector<4x128xf32>, vector<64x128xf32> -> vector<64x128xf32>
    %17 = arith.addf %13, %16 : vector<64x128xf32>
    %c0_18 = arith.constant 0 : index
    %c0_19 = arith.constant 0 : index
    %18 = vector.load %arg3[%c0_18, %c0_19] : memref<64x1xf32, #tpu.memory_space<vmem>>, vector<64x1xf32>
    %c0_20 = arith.constant 0 : index
    %c0_21 = arith.constant 0 : index
    %19 = vector.load %arg12[%c0_20, %c0_21] : memref<1x128xf32, #tpu.memory_space<vmem>>, vector<1x128xf32>
    %20 = vector.broadcast %18 : vector<64x1xf32> to vector<64x128xf32>
    %21 = vector.broadcast %19 : vector<1x128xf32> to vector<64x128xf32>
    %22 = arith.mulf %20, %21 : vector<64x128xf32>
    %23 = arith.addf %17, %22 : vector<64x128xf32>
    %c0_22 = arith.constant 0 : index
    %c0_23 = arith.constant 0 : index
    %24 = vector.load %arg14[%c0_22, %c0_23] : memref<1x128xf32, #tpu.memory_space<vmem>>, vector<1x128xf32>
    %25 = vector.broadcast %24 : vector<1x128xf32> to vector<64x128xf32>
    %26 = arith.addf %23, %25 : vector<64x128xf32>
    %c0_24 = arith.constant 0 : index
    %c0_25 = arith.constant 0 : index
    %27 = vector.load %arg13[%c0_24, %c0_25] : memref<32x128xf32, #tpu.memory_space<vmem>>, vector<32x128xf32>
    %c0_26 = arith.constant 0 : index
    %c0_27 = arith.constant 0 : index
    %28 = vector.load %arg4[%c0_26, %c0_27] : memref<8x32xf32, #tpu.memory_space<vmem>>, vector<8x32xf32>
    %c0_28 = arith.constant 0 : index
    %c0_29 = arith.constant 0 : index
    %29 = vector.load %arg5[%c0_28, %c0_29] : memref<8x32xf32, #tpu.memory_space<vmem>>, vector<8x32xf32>
    %30 = vector.extract_strided_slice %26 {offsets = [0, 0], sizes = [8, 128], strides = [1, 1]} : vector<64x128xf32> to vector<8x128xf32>
    %cst_30 = arith.constant dense<0.000000e+00> : vector<8x128xf32>
    %31 = tpu.matmul %28, %27, %cst_30 {dimension_numbers = #tpu.dot_dimension_numbers<[1], [0], [0], [1], [0, 0, 1, 1], [], []>} : vector<8x32xf32>, vector<32x128xf32>, vector<8x128xf32> -> vector<8x128xf32>
    %32 = arith.addf %30, %31 : vector<8x128xf32>
    %33 = vector.extract_strided_slice %32 {offsets = [0, 0], sizes = [8, 96], strides = [1, 1]} : vector<8x128xf32> to vector<8x96xf32>
    %34 = arith.negf %33 : vector<8x96xf32>
    %35 = math.exp %34 : vector<8x96xf32>
    %cst_31 = arith.constant 1.000000e+00 : f32
    %36 = vector.broadcast %cst_31 : f32 to vector<8x96xf32>
    %37 = arith.addf %36, %35 : vector<8x96xf32>
    %38 = arith.divf %36, %37 : vector<8x96xf32>
    %39 = vector.extract_strided_slice %38 {offsets = [0, 0], sizes = [8, 32], strides = [1, 1]} : vector<8x96xf32> to vector<8x32xf32>
    %40 = vector.extract_strided_slice %38 {offsets = [0, 32], sizes = [8, 32], strides = [1, 1]} : vector<8x96xf32> to vector<8x32xf32>
    %41 = vector.extract_strided_slice %38 {offsets = [0, 64], sizes = [8, 32], strides = [1, 1]} : vector<8x96xf32> to vector<8x32xf32>
    %42 = vector.extract_strided_slice %32 {offsets = [0, 96], sizes = [8, 32], strides = [1, 1]} : vector<8x128xf32> to vector<8x32xf32>
    %43 = math.tanh %42 : vector<8x32xf32>
    %44 = arith.mulf %40, %29 : vector<8x32xf32>
    %45 = arith.mulf %39, %43 : vector<8x32xf32>
    %46 = arith.addf %44, %45 : vector<8x32xf32>
    %47 = math.tanh %46 : vector<8x32xf32>
    %48 = arith.mulf %41, %47 : vector<8x32xf32>
    %c0_32 = arith.constant 0 : index
    %c0_33 = arith.constant 0 : index
    %49 = vector.load %arg22[%c0_32, %c0_33] : memref<64x32xf32, #tpu.memory_space<vmem>>, vector<8x32xf32>
    tpu.vector_store %arg22[%c0_32, %c0_33], %48 {strides = array<i32>} : memref<64x32xf32, #tpu.memory_space<vmem>>, vector<8x32xf32>,
    %50 = vector.extract_strided_slice %26 {offsets = [8, 0], sizes = [8, 128], strides = [1, 1]} : vector<64x128xf32> to vector<8x128xf32>
    %cst_34 = arith.constant dense<0.000000e+00> : vector<8x128xf32>
    %51 = tpu.matmul %48, %27, %cst_34 {dimension_numbers = #tpu.dot_dimension_numbers<[1], [0], [0], [1], [0, 0, 1, 1], [], []>} : vector<8x32xf32>, vector<32x128xf32>, vector<8x128xf32> -> vector<8x128xf32>
    %52 = arith.addf %50, %51 : vector<8x128xf32>
    %53 = vector.extract_strided_slice %52 {offsets = [0, 0], sizes = [8, 96], strides = [1, 1]} : vector<8x128xf32> to vector<8x96xf32>
    %54 = arith.negf %53 : vector<8x96xf32>
    %55 = math.exp %54 : vector<8x96xf32>
    %cst_35 = arith.constant 1.000000e+00 : f32
    %56 = vector.broadcast %cst_35 : f32 to vector<8x96xf32>
    %57 = arith.addf %56, %55 : vector<8x96xf32>
    %58 = arith.divf %56, %57 : vector<8x96xf32>
    %59 = vector.extract_strided_slice %58 {offsets = [0, 0], sizes = [8, 32], strides = [1, 1]} : vector<8x96xf32> to vector<8x32xf32>
    %60 = vector.extract_strided_slice %58 {offsets = [0, 32], sizes = [8, 32], strides = [1, 1]} : vector<8x96xf32> to vector<8x32xf32>
    %61 = vector.extract_strided_slice %58 {offsets = [0, 64], sizes = [8, 32], strides = [1, 1]} : vector<8x96xf32> to vector<8x32xf32>
    %62 = vector.extract_strided_slice %52 {offsets = [0, 96], sizes = [8, 32], strides = [1, 1]} : vector<8x128xf32> to vector<8x32xf32>
    %63 = math.tanh %62 : vector<8x32xf32>
    %64 = arith.mulf %60, %46 : vector<8x32xf32>
    %65 = arith.mulf %59, %63 : vector<8x32xf32>
    %66 = arith.addf %64, %65 : vector<8x32xf32>
    %67 = math.tanh %66 : vector<8x32xf32>
    %68 = arith.mulf %61, %67 : vector<8x32xf32>
    %c8 = arith.constant 8 : index
    %c0_36 = arith.constant 0 : index
    %69 = vector.load %arg22[%c8, %c0_36] : memref<64x32xf32, #tpu.memory_space<vmem>>, vector<8x32xf32>
    tpu.vector_store %arg22[%c8, %c0_36], %68 {strides = array<i32>} : memref<64x32xf32, #tpu.memory_space<vmem>>, vector<8x32xf32>,
    %70 = vector.extract_strided_slice %26 {offsets = [16, 0], sizes = [8, 128], strides = [1, 1]} : vector<64x128xf32> to vector<8x128xf32>
    %cst_37 = arith.constant dense<0.000000e+00> : vector<8x128xf32>
    %71 = tpu.matmul %68, %27, %cst_37 {dimension_numbers = #tpu.dot_dimension_numbers<[1], [0], [0], [1], [0, 0, 1, 1], [], []>} : vector<8x32xf32>, vector<32x128xf32>, vector<8x128xf32> -> vector<8x128xf32>
    %72 = arith.addf %70, %71 : vector<8x128xf32>
    %73 = vector.extract_strided_slice %72 {offsets = [0, 0], sizes = [8, 96], strides = [1, 1]} : vector<8x128xf32> to vector<8x96xf32>
    %74 = arith.negf %73 : vector<8x96xf32>
    %75 = math.exp %74 : vector<8x96xf32>
    %cst_38 = arith.constant 1.000000e+00 : f32
    %76 = vector.broadcast %cst_38 : f32 to vector<8x96xf32>
    %77 = arith.addf %76, %75 : vector<8x96xf32>
    %78 = arith.divf %76, %77 : vector<8x96xf32>
    %79 = vector.extract_strided_slice %78 {offsets = [0, 0], sizes = [8, 32], strides = [1, 1]} : vector<8x96xf32> to vector<8x32xf32>
    %80 = vector.extract_strided_slice %78 {offsets = [0, 32], sizes = [8, 32], strides = [1, 1]} : vector<8x96xf32> to vector<8x32xf32>
    %81 = vector.extract_strided_slice %78 {offsets = [0, 64], sizes = [8, 32], strides = [1, 1]} : vector<8x96xf32> to vector<8x32xf32>
    %82 = vector.extract_strided_slice %72 {offsets = [0, 96], sizes = [8, 32], strides = [1, 1]} : vector<8x128xf32> to vector<8x32xf32>
    %83 = math.tanh %82 : vector<8x32xf32>
    %84 = arith.mulf %80, %66 : vector<8x32xf32>
    %85 = arith.mulf %79, %83 : vector<8x32xf32>
    %86 = arith.addf %84, %85 : vector<8x32xf32>
    %87 = math.tanh %86 : vector<8x32xf32>
    %88 = arith.mulf %81, %87 : vector<8x32xf32>
    %c16 = arith.constant 16 : index
    %c0_39 = arith.constant 0 : index
    %89 = vector.load %arg22[%c16, %c0_39] : memref<64x32xf32, #tpu.memory_space<vmem>>, vector<8x32xf32>
    tpu.vector_store %arg22[%c16, %c0_39], %88 {strides = array<i32>} : memref<64x32xf32, #tpu.memory_space<vmem>>, vector<8x32xf32>,
    %90 = vector.extract_strided_slice %26 {offsets = [24, 0], sizes = [8, 128], strides = [1, 1]} : vector<64x128xf32> to vector<8x128xf32>
    %cst_40 = arith.constant dense<0.000000e+00> : vector<8x128xf32>
    %91 = tpu.matmul %88, %27, %cst_40 {dimension_numbers = #tpu.dot_dimension_numbers<[1], [0], [0], [1], [0, 0, 1, 1], [], []>} : vector<8x32xf32>, vector<32x128xf32>, vector<8x128xf32> -> vector<8x128xf32>
    %92 = arith.addf %90, %91 : vector<8x128xf32>
    %93 = vector.extract_strided_slice %92 {offsets = [0, 0], sizes = [8, 96], strides = [1, 1]} : vector<8x128xf32> to vector<8x96xf32>
    %94 = arith.negf %93 : vector<8x96xf32>
    %95 = math.exp %94 : vector<8x96xf32>
    %cst_41 = arith.constant 1.000000e+00 : f32
    %96 = vector.broadcast %cst_41 : f32 to vector<8x96xf32>
    %97 = arith.addf %96, %95 : vector<8x96xf32>
    %98 = arith.divf %96, %97 : vector<8x96xf32>
    %99 = vector.extract_strided_slice %98 {offsets = [0, 0], sizes = [8, 32], strides = [1, 1]} : vector<8x96xf32> to vector<8x32xf32>
    %100 = vector.extract_strided_slice %98 {offsets = [0, 32], sizes = [8, 32], strides = [1, 1]} : vector<8x96xf32> to vector<8x32xf32>
    %101 = vector.extract_strided_slice %98 {offsets = [0, 64], sizes = [8, 32], strides = [1, 1]} : vector<8x96xf32> to vector<8x32xf32>
    %102 = vector.extract_strided_slice %92 {offsets = [0, 96], sizes = [8, 32], strides = [1, 1]} : vector<8x128xf32> to vector<8x32xf32>
    %103 = math.tanh %102 : vector<8x32xf32>
    %104 = arith.mulf %100, %86 : vector<8x32xf32>
    %105 = arith.mulf %99, %103 : vector<8x32xf32>
    %106 = arith.addf %104, %105 : vector<8x32xf32>
    %107 = math.tanh %106 : vector<8x32xf32>
    %108 = arith.mulf %101, %107 : vector<8x32xf32>
    %c24 = arith.constant 24 : index
    %c0_42 = arith.constant 0 : index
    %109 = vector.load %arg22[%c24, %c0_42] : memref<64x32xf32, #tpu.memory_space<vmem>>, vector<8x32xf32>
    tpu.vector_store %arg22[%c24, %c0_42], %108 {strides = array<i32>} : memref<64x32xf32, #tpu.memory_space<vmem>>, vector<8x32xf32>,
    %110 = vector.extract_strided_slice %26 {offsets = [32, 0], sizes = [8, 128], strides = [1, 1]} : vector<64x128xf32> to vector<8x128xf32>
    %cst_43 = arith.constant dense<0.000000e+00> : vector<8x128xf32>
    %111 = tpu.matmul %108, %27, %cst_43 {dimension_numbers = #tpu.dot_dimension_numbers<[1], [0], [0], [1], [0, 0, 1, 1], [], []>} : vector<8x32xf32>, vector<32x128xf32>, vector<8x128xf32> -> vector<8x128xf32>
    %112 = arith.addf %110, %111 : vector<8x128xf32>
    %113 = vector.extract_strided_slice %112 {offsets = [0, 0], sizes = [8, 96], strides = [1, 1]} : vector<8x128xf32> to vector<8x96xf32>
    %114 = arith.negf %113 : vector<8x96xf32>
    %115 = math.exp %114 : vector<8x96xf32>
    %cst_44 = arith.constant 1.000000e+00 : f32
    %116 = vector.broadcast %cst_44 : f32 to vector<8x96xf32>
    %117 = arith.addf %116, %115 : vector<8x96xf32>
    %118 = arith.divf %116, %117 : vector<8x96xf32>
    %119 = vector.extract_strided_slice %118 {offsets = [0, 0], sizes = [8, 32], strides = [1, 1]} : vector<8x96xf32> to vector<8x32xf32>
    %120 = vector.extract_strided_slice %118 {offsets = [0, 32], sizes = [8, 32], strides = [1, 1]} : vector<8x96xf32> to vector<8x32xf32>
    %121 = vector.extract_strided_slice %118 {offsets = [0, 64], sizes = [8, 32], strides = [1, 1]} : vector<8x96xf32> to vector<8x32xf32>
    %122 = vector.extract_strided_slice %112 {offsets = [0, 96], sizes = [8, 32], strides = [1, 1]} : vector<8x128xf32> to vector<8x32xf32>
    %123 = math.tanh %122 : vector<8x32xf32>
    %124 = arith.mulf %120, %106 : vector<8x32xf32>
    %125 = arith.mulf %119, %123 : vector<8x32xf32>
    %126 = arith.addf %124, %125 : vector<8x32xf32>
    %127 = math.tanh %126 : vector<8x32xf32>
    %128 = arith.mulf %121, %127 : vector<8x32xf32>
    %c32 = arith.constant 32 : index
    %c0_45 = arith.constant 0 : index
    %129 = vector.load %arg22[%c32, %c0_45] : memref<64x32xf32, #tpu.memory_space<vmem>>, vector<8x32xf32>
    tpu.vector_store %arg22[%c32, %c0_45], %128 {strides = array<i32>} : memref<64x32xf32, #tpu.memory_space<vmem>>, vector<8x32xf32>,
    %130 = vector.extract_strided_slice %26 {offsets = [40, 0], sizes = [8, 128], strides = [1, 1]} : vector<64x128xf32> to vector<8x128xf32>
    %cst_46 = arith.constant dense<0.000000e+00> : vector<8x128xf32>
    %131 = tpu.matmul %128, %27, %cst_46 {dimension_numbers = #tpu.dot_dimension_numbers<[1], [0], [0], [1], [0, 0, 1, 1], [], []>} : vector<8x32xf32>, vector<32x128xf32>, vector<8x128xf32> -> vector<8x128xf32>
    %132 = arith.addf %130, %131 : vector<8x128xf32>
    %133 = vector.extract_strided_slice %132 {offsets = [0, 0], sizes = [8, 96], strides = [1, 1]} : vector<8x128xf32> to vector<8x96xf32>
    %134 = arith.negf %133 : vector<8x96xf32>
    %135 = math.exp %134 : vector<8x96xf32>
    %cst_47 = arith.constant 1.000000e+00 : f32
    %136 = vector.broadcast %cst_47 : f32 to vector<8x96xf32>
    %137 = arith.addf %136, %135 : vector<8x96xf32>
    %138 = arith.divf %136, %137 : vector<8x96xf32>
    %139 = vector.extract_strided_slice %138 {offsets = [0, 0], sizes = [8, 32], strides = [1, 1]} : vector<8x96xf32> to vector<8x32xf32>
    %140 = vector.extract_strided_slice %138 {offsets = [0, 32], sizes = [8, 32], strides = [1, 1]} : vector<8x96xf32> to vector<8x32xf32>
    %141 = vector.extract_strided_slice %138 {offsets = [0, 64], sizes = [8, 32], strides = [1, 1]} : vector<8x96xf32> to vector<8x32xf32>
    %142 = vector.extract_strided_slice %132 {offsets = [0, 96], sizes = [8, 32], strides = [1, 1]} : vector<8x128xf32> to vector<8x32xf32>
    %143 = math.tanh %142 : vector<8x32xf32>
    %144 = arith.mulf %140, %126 : vector<8x32xf32>
    %145 = arith.mulf %139, %143 : vector<8x32xf32>
    %146 = arith.addf %144, %145 : vector<8x32xf32>
    %147 = math.tanh %146 : vector<8x32xf32>
    %148 = arith.mulf %141, %147 : vector<8x32xf32>
    %c40 = arith.constant 40 : index
    %c0_48 = arith.constant 0 : index
    %149 = vector.load %arg22[%c40, %c0_48] : memref<64x32xf32, #tpu.memory_space<vmem>>, vector<8x32xf32>
    tpu.vector_store %arg22[%c40, %c0_48], %148 {strides = array<i32>} : memref<64x32xf32, #tpu.memory_space<vmem>>, vector<8x32xf32>,
    %150 = vector.extract_strided_slice %26 {offsets = [48, 0], sizes = [8, 128], strides = [1, 1]} : vector<64x128xf32> to vector<8x128xf32>
    %cst_49 = arith.constant dense<0.000000e+00> : vector<8x128xf32>
    %151 = tpu.matmul %148, %27, %cst_49 {dimension_numbers = #tpu.dot_dimension_numbers<[1], [0], [0], [1], [0, 0, 1, 1], [], []>} : vector<8x32xf32>, vector<32x128xf32>, vector<8x128xf32> -> vector<8x128xf32>
    %152 = arith.addf %150, %151 : vector<8x128xf32>
    %153 = vector.extract_strided_slice %152 {offsets = [0, 0], sizes = [8, 96], strides = [1, 1]} : vector<8x128xf32> to vector<8x96xf32>
    %154 = arith.negf %153 : vector<8x96xf32>
    %155 = math.exp %154 : vector<8x96xf32>
    %cst_50 = arith.constant 1.000000e+00 : f32
    %156 = vector.broadcast %cst_50 : f32 to vector<8x96xf32>
    %157 = arith.addf %156, %155 : vector<8x96xf32>
    %158 = arith.divf %156, %157 : vector<8x96xf32>
    %159 = vector.extract_strided_slice %158 {offsets = [0, 0], sizes = [8, 32], strides = [1, 1]} : vector<8x96xf32> to vector<8x32xf32>
    %160 = vector.extract_strided_slice %158 {offsets = [0, 32], sizes = [8, 32], strides = [1, 1]} : vector<8x96xf32> to vector<8x32xf32>
    %161 = vector.extract_strided_slice %158 {offsets = [0, 64], sizes = [8, 32], strides = [1, 1]} : vector<8x96xf32> to vector<8x32xf32>
    %162 = vector.extract_strided_slice %152 {offsets = [0, 96], sizes = [8, 32], strides = [1, 1]} : vector<8x128xf32> to vector<8x32xf32>
    %163 = math.tanh %162 : vector<8x32xf32>
    %164 = arith.mulf %160, %146 : vector<8x32xf32>
    %165 = arith.mulf %159, %163 : vector<8x32xf32>
    %166 = arith.addf %164, %165 : vector<8x32xf32>
    %167 = math.tanh %166 : vector<8x32xf32>
    %168 = arith.mulf %161, %167 : vector<8x32xf32>
    %c48 = arith.constant 48 : index
    %c0_51 = arith.constant 0 : index
    %169 = vector.load %arg22[%c48, %c0_51] : memref<64x32xf32, #tpu.memory_space<vmem>>, vector<8x32xf32>
    tpu.vector_store %arg22[%c48, %c0_51], %168 {strides = array<i32>} : memref<64x32xf32, #tpu.memory_space<vmem>>, vector<8x32xf32>,
    %170 = vector.extract_strided_slice %26 {offsets = [56, 0], sizes = [8, 128], strides = [1, 1]} : vector<64x128xf32> to vector<8x128xf32>
    %cst_52 = arith.constant dense<0.000000e+00> : vector<8x128xf32>
    %171 = tpu.matmul %168, %27, %cst_52 {dimension_numbers = #tpu.dot_dimension_numbers<[1], [0], [0], [1], [0, 0, 1, 1], [], []>} : vector<8x32xf32>, vector<32x128xf32>, vector<8x128xf32> -> vector<8x128xf32>
    %172 = arith.addf %170, %171 : vector<8x128xf32>
    %173 = vector.extract_strided_slice %172 {offsets = [0, 0], sizes = [8, 96], strides = [1, 1]} : vector<8x128xf32> to vector<8x96xf32>
    %174 = arith.negf %173 : vector<8x96xf32>
    %175 = math.exp %174 : vector<8x96xf32>
    %cst_53 = arith.constant 1.000000e+00 : f32
    %176 = vector.broadcast %cst_53 : f32 to vector<8x96xf32>
    %177 = arith.addf %176, %175 : vector<8x96xf32>
    %178 = arith.divf %176, %177 : vector<8x96xf32>
    %179 = vector.extract_strided_slice %178 {offsets = [0, 0], sizes = [8, 32], strides = [1, 1]} : vector<8x96xf32> to vector<8x32xf32>
    %180 = vector.extract_strided_slice %178 {offsets = [0, 32], sizes = [8, 32], strides = [1, 1]} : vector<8x96xf32> to vector<8x32xf32>
    %181 = vector.extract_strided_slice %178 {offsets = [0, 64], sizes = [8, 32], strides = [1, 1]} : vector<8x96xf32> to vector<8x32xf32>
    %182 = vector.extract_strided_slice %172 {offsets = [0, 96], sizes = [8, 32], strides = [1, 1]} : vector<8x128xf32> to vector<8x32xf32>
    %183 = math.tanh %182 : vector<8x32xf32>
    %184 = arith.mulf %180, %166 : vector<8x32xf32>
    %185 = arith.mulf %179, %183 : vector<8x32xf32>
    %186 = arith.addf %184, %185 : vector<8x32xf32>
    %187 = math.tanh %186 : vector<8x32xf32>
    %188 = arith.mulf %181, %187 : vector<8x32xf32>
    %c56 = arith.constant 56 : index
    %c0_54 = arith.constant 0 : index
    %189 = vector.load %arg22[%c56, %c0_54] : memref<64x32xf32, #tpu.memory_space<vmem>>, vector<8x32xf32>
    tpu.vector_store %arg22[%c56, %c0_54], %188 {strides = array<i32>} : memref<64x32xf32, #tpu.memory_space<vmem>>, vector<8x32xf32>,
    %c0_55 = arith.constant 0 : index
    %c0_56 = arith.constant 0 : index
    %190 = vector.load %arg20[%c0_55, %c0_56] : memref<8x32xf32, #tpu.memory_space<vmem>>, vector<8x32xf32>
    tpu.vector_store %arg20[%c0_55, %c0_56], %188 {strides = array<i32>} : memref<8x32xf32, #tpu.memory_space<vmem>>, vector<8x32xf32>,
    %c0_57 = arith.constant 0 : index
    %c0_58 = arith.constant 0 : index
    %191 = vector.load %arg21[%c0_57, %c0_58] : memref<8x32xf32, #tpu.memory_space<vmem>>, vector<8x32xf32>
    tpu.vector_store %arg21[%c0_57, %c0_58], %186 {strides = array<i32>} : memref<8x32xf32, #tpu.memory_space<vmem>>, vector<8x32xf32>,
    %c0_59 = arith.constant 0 : index
    %c0_60 = arith.constant 0 : index
    %192 = vector.load %arg22[%c0_59, %c0_60] : memref<64x32xf32, #tpu.memory_space<vmem>>, vector<64x32xf32>
    %c0_61 = arith.constant 0 : index
    %c0_62 = arith.constant 0 : index
    %193 = vector.load %arg15[%c0_61, %c0_62] : memref<32x32xf32, #tpu.memory_space<vmem>>, vector<32x32xf32>
    %cst_63 = arith.constant dense<0.000000e+00> : vector<64x32xf32>
    %194 = tpu.matmul %192, %193, %cst_63 {dimension_numbers = #tpu.dot_dimension_numbers<[1], [0], [0], [1], [0, 0, 1, 1], [], []>} : vector<64x32xf32>, vector<32x32xf32>, vector<64x32xf32> -> vector<64x32xf32>
    %c0_64 = arith.constant 0 : index
    %c0_65 = arith.constant 0 : index
    %195 = vector.load %arg16[%c0_64, %c0_65] : memref<1x32xf32, #tpu.memory_space<vmem>>, vector<1x32xf32>
    %196 = vector.broadcast %195 : vector<1x32xf32> to vector<64x32xf32>
    %197 = arith.addf %194, %196 : vector<64x32xf32>
    %cst_66 = arith.constant 0.000000e+00 : f32
    %198 = vector.broadcast %cst_66 : f32 to vector<64x32xf32>
    %199 = arith.maximumf %197, %198 : vector<64x32xf32>
    %c0_67 = arith.constant 0 : index
    %c0_68 = arith.constant 0 : index
    %200 = vector.load %arg17[%c0_67, %c0_68] : memref<32x128xf32, #tpu.memory_space<vmem>>, vector<32x128xf32>
    %cst_69 = arith.constant dense<0.000000e+00> : vector<64x128xf32>
    %201 = tpu.matmul %199, %200, %cst_69 {dimension_numbers = #tpu.dot_dimension_numbers<[1], [0], [0], [1], [0, 0, 1, 1], [], []>} : vector<64x32xf32>, vector<32x128xf32>, vector<64x128xf32> -> vector<64x128xf32>
    %c0_70 = arith.constant 0 : index
    %c0_71 = arith.constant 0 : index
    %202 = vector.load %arg18[%c0_70, %c0_71] : memref<1x128xf32, #tpu.memory_space<vmem>>, vector<1x128xf32>
    %203 = vector.broadcast %202 : vector<1x128xf32> to vector<64x128xf32>
    %204 = arith.addf %201, %203 : vector<64x128xf32>
    %c0_72 = arith.constant 0 : index
    %c0_73 = arith.constant 0 : index
    %205 = vector.load %arg19[%c0_72, %c0_73] : memref<64x128xf32, #tpu.memory_space<vmem>>, vector<64x128xf32>
    tpu.vector_store %arg19[%c0_72, %c0_73], %204 {strides = array<i32>} : memref<64x128xf32, #tpu.memory_space<vmem>>, vector<64x128xf32>,
    return
  }
  func.func @transform_0(%arg0: i32) -> (i32, i32) {
    %c0_i32 = arith.constant 0 : i32
    %c0_i32_0 = arith.constant 0 : i32
    %c0_i32_1 = arith.constant 0 : i32
    return %c0_i32, %c0_i32_0 : i32, i32
  }
  func.func @transform_1(%arg0: i32) -> (i32, i32) {
    %c0_i32 = arith.constant 0 : i32
    %c0_i32_0 = arith.constant 0 : i32
    %c0_i32_1 = arith.constant 0 : i32
    return %c0_i32, %c0_i32_0 : i32, i32
  }
  func.func @transform_2(%arg0: i32) -> (i32, i32) {
    %c0_i32 = arith.constant 0 : i32
    %c0_i32_0 = arith.constant 0 : i32
    %c0_i32_1 = arith.constant 0 : i32
    return %c0_i32, %c0_i32_0 : i32, i32
  }
  func.func @transform_3(%arg0: i32) -> (i32, i32) {
    %c0_i32 = arith.constant 0 : i32
    %c0_i32_0 = arith.constant 0 : i32
    %c0_i32_1 = arith.constant 0 : i32
    return %c0_i32, %c0_i32_0 : i32, i32
  }
  func.func @transform_4(%arg0: i32) -> (i32, i32) {
    %c0_i32 = arith.constant 0 : i32
    %c0_i32_0 = arith.constant 0 : i32
    %c0_i32_1 = arith.constant 0 : i32
    return %c0_i32, %c0_i32_0 : i32, i32
  }
  func.func @transform_5(%arg0: i32) -> (i32, i32) {
    %c0_i32 = arith.constant 0 : i32
    %c0_i32_0 = arith.constant 0 : i32
    %c0_i32_1 = arith.constant 0 : i32
    return %c0_i32, %c0_i32_0 : i32, i32
  }
  func.func @transform_6(%arg0: i32) -> (i32, i32) {
    %c0_i32 = arith.constant 0 : i32
    %c0_i32_0 = arith.constant 0 : i32
    %c0_i32_1 = arith.constant 0 : i32
    return %c0_i32, %c0_i32_0 : i32, i32
  }
  func.func @transform_7(%arg0: i32) -> (i32, i32) {
    %c0_i32 = arith.constant 0 : i32
    %c0_i32_0 = arith.constant 0 : i32
    %c0_i32_1 = arith.constant 0 : i32
    return %c0_i32, %c0_i32_0 : i32, i32
  }
  func.func @transform_8(%arg0: i32) -> (i32, i32) {
    %c0_i32 = arith.constant 0 : i32
    %c0_i32_0 = arith.constant 0 : i32
    %c0_i32_1 = arith.constant 0 : i32
    return %c0_i32, %c0_i32_0 : i32, i32
  }
  func.func @transform_9(%arg0: i32) -> (i32, i32) {
    %c0_i32 = arith.constant 0 : i32
    %c0_i32_0 = arith.constant 0 : i32
    %c0_i32_1 = arith.constant 0 : i32
    return %c0_i32, %c0_i32_0 : i32, i32
  }
  func.func @transform_10(%arg0: i32) -> (i32, i32) {
    %c0_i32 = arith.constant 0 : i32
    %c0_i32_0 = arith.constant 0 : i32
    %c0_i32_1 = arith.constant 0 : i32
    return %c0_i32, %c0_i32_0 : i32, i32
  }
  func.func @transform_11(%arg0: i32) -> (i32, i32) {
    %c0_i32 = arith.constant 0 : i32
    %c0_i32_0 = arith.constant 0 : i32
    %c0_i32_1 = arith.constant 0 : i32
    return %c0_i32, %c0_i32_0 : i32, i32
  }
  func.func @transform_12(%arg0: i32) -> (i32, i32) {
    %c0_i32 = arith.constant 0 : i32
    %c0_i32_0 = arith.constant 0 : i32
    %c0_i32_1 = arith.constant 0 : i32
    return %c0_i32, %c0_i32_0 : i32, i32
  }
  func.func @transform_13(%arg0: i32) -> (i32, i32) {
    %c0_i32 = arith.constant 0 : i32
    %c0_i32_0 = arith.constant 0 : i32
    %c0_i32_1 = arith.constant 0 : i32
    return %c0_i32, %c0_i32_0 : i32, i32
  }
  func.func @transform_14(%arg0: i32) -> (i32, i32) {
    %c0_i32 = arith.constant 0 : i32
    %c0_i32_0 = arith.constant 0 : i32
    %c0_i32_1 = arith.constant 0 : i32
    return %c0_i32, %c0_i32_0 : i32, i32
  }
  func.func @transform_15(%arg0: i32) -> (i32, i32) {
    %c0_i32 = arith.constant 0 : i32
    %c0_i32_0 = arith.constant 0 : i32
    %c0_i32_1 = arith.constant 0 : i32
    return %c0_i32, %c0_i32_0 : i32, i32
  }
  func.func @transform_16(%arg0: i32) -> (i32, i32) {
    %c0_i32 = arith.constant 0 : i32
    %c0_i32_0 = arith.constant 0 : i32
    %c0_i32_1 = arith.constant 0 : i32
    return %c0_i32, %c0_i32_0 : i32, i32
  }
  func.func @transform_17(%arg0: i32) -> (i32, i32) {
    %c0_i32 = arith.constant 0 : i32
    %c0_i32_0 = arith.constant 0 : i32
    %c0_i32_1 = arith.constant 0 : i32
    return %c0_i32, %c0_i32_0 : i32, i32
  }
  func.func @transform_18(%arg0: i32) -> (i32, i32) {
    %c0_i32 = arith.constant 0 : i32
    %c0_i32_0 = arith.constant 0 : i32
    %c0_i32_1 = arith.constant 0 : i32
    return %c0_i32, %c0_i32_0 : i32, i32
  }
  func.func @transform_19(%arg0: i32) -> (i32, i32) {
    %c0_i32 = arith.constant 0 : i32
    %c0_i32_0 = arith.constant 0 : i32
    %c0_i32_1 = arith.constant 0 : i32
    return %c0_i32, %c0_i32_0 : i32, i32
  }
  func.func @transform_20(%arg0: i32) -> (i32, i32) {
    %c0_i32 = arith.constant 0 : i32
    %c0_i32_0 = arith.constant 0 : i32
    %c0_i32_1 = arith.constant 0 : i32
    return %c0_i32, %c0_i32_0 : i32, i32
  }
}

</mosaic_0001>

<bundles_post_ra>
// kernel: tpu_custom_call.1
= control target key start
LH: loop header
LB: loop body
LE: loop exit
PB: predicated region body
PF: predicated region fallthrough
CT: control target
= control target key end

     0   :  { %s3131_s0 = inlined_call_operand.vmem [shape: f32[64,16], index: 0, kind: input, shape index: {}]   ;;  %s3132_s1 = inlined_call_operand.vmem [shape: f32[64,4], index: 1, kind: input, shape index: {}]   ;;  %s3133_s2 = inlined_call_operand.vmem [shape: f32[64,1], index: 2, kind: input, shape index: {}]   ;;  %s3134_s3 = inlined_call_operand.vmem [shape: f32[8,32], index: 3, kind: input, shape index: {}]   ;;  %s3135_s4 = inlined_call_operand.vmem [shape: f32[8,32], index: 4, kind: input, shape index: {}]   ;;  %s3136_s5 = inlined_call_operand.vmem [shape: f32[16,256], index: 5, kind: input, shape index: {}]   ;;  %s3137_s6 = inlined_call_operand.vmem [shape: f32[1,256], index: 6, kind: input, shape index: {}]   ;;  %s3138_s7 = inlined_call_operand.vmem [shape: f32[256,32], index: 7, kind: input, shape index: {}]   ;;  %s3139_s8 = inlined_call_operand.vmem [shape: f32[1,32], index: 8, kind: input, shape index: {}]   ;;  %s3140_s9 = inlined_call_operand.vmem [shape: f32[32,128], index: 9, kind: input, shape index: {}]   ;;  %s3141_s10 = inlined_call_operand.vmem [shape: f32[4,128], index: 10, kind: input, shape index: {}]   ;;  %s3142_s11 = inlined_call_operand.vmem [shape: f32[1,128], index: 11, kind: input, shape index: {}]   ;;  %s3143_s12 = inlined_call_operand.vmem [shape: f32[32,128], index: 12, kind: input, shape index: {}]   ;;  %s3144_s13 = inlined_call_operand.vmem [shape: f32[1,128], index: 13, kind: input, shape index: {}]   ;;  %s3145_s14 = inlined_call_operand.vmem [shape: f32[32,32], index: 14, kind: input, shape index: {}]   ;;  %s3146_s15 = inlined_call_operand.vmem [shape: f32[1,32], index: 15, kind: input, shape index: {}]   ;;  %s3147_s16 = inlined_call_operand.vmem [shape: f32[32,128], index: 16, kind: input, shape index: {}]   ;;  %s3148_s17 = inlined_call_operand.vmem [shape: f32[1,128], index: 17, kind: input, shape index: {}]   ;;  %s3149_s18 = inlined_call_operand.hbm [shape: f32[64,128], index: 18, kind: output, shape index: {0}]   ;;  %s3150_s19 = inlined_call_operand.hbm [shape: f32[8,32], index: 19, kind: output, shape index: {1}]   ;;  %s3151_s20 = inlined_call_operand.hbm [shape: f32[8,32], index: 20, kind: output, shape index: {2}]  }
   0x1   :  { %3155 = sst [smem:[#allocation10_spill]] %s3131_s0 }
   0x2   :  { %3156 = sst [smem:[#allocation11_spill]] %s3132_s1 }
   0x3   :  { %3157 = sst [smem:[#allocation12_spill]] %s3133_s2 }
   0x4   :  { %3158 = sst [smem:[#allocation13_spill]] %s3134_s3 }
   0x5   :  { %3159 = sst [smem:[#allocation14_spill]] %s3135_s4 }
   0x6   :  { %26 = vsyncpa [#allocation4], 0  ;;  %v75_v0 = vld [vmem:[%s3136_s5 + $0x18] sm:$0xff]  ;;  %v74_v1 = vld [vmem:[%s3136_s5 + $0x10] sm:$0xff]  ;;  %v2467_v4 = vmov 0.0   ;;  %s3160_s4 = sld [smem:[#allocation10_spill]] }
   0x7   :  { %v73_v2 = vld [vmem:[%s3136_s5 + $0x8] sm:$0xff]  ;;  %141 = vmatprep.subr.mxu0 %v75_v0  ;;  %v72_v3 = vld [vmem:[%s3136_s5] sm:$0xff]  ;;  %177 = vmatprep.mubr.f32.mxu0 %v2467_v4  ;;  %vm88_vm0 = vcmask 130048   ;;  %v273_v6 = vld [vmem:[%s3138_s7 + $0xf8] sm:$0xff] }
   0x8   :  { %142 = vmatpush1.msra.mxu0 %v74_v1  ;;  %v257_v7 = vld [vmem:[%s3138_s7 + $0x78] sm:$0xff]  ;;  %v272_v8 = vld [vmem:[%s3138_s7 + $0xf0] sm:$0xff]  ;;  %1991 = vmatprep.subr.mxu1 %v273_v6  ;;  %v271_v11 = vld [vmem:[%s3138_s7 + $0xe8] sm:$0xff] }
   0x9   :  { %143 = vmatprep.subr.mxu0 %v73_v2  ;;  %v256_v9 = vld [vmem:[%s3138_s7 + $0x70] sm:$0xff]  ;;  %1992 = vmatpush3.msra.mxu1 %v257_v7  ;;  %v255_v12 = vld [vmem:[%s3138_s7 + $0x68] sm:$0xff]  ;;  %v270_v13 = vld [vmem:[%s3138_s7 + $0xe0] sm:$0xff] }
   0xa   :  { %144 = vmatpush1.msra.mxu0 %v72_v3  ;;  %1993 = vmatprep.subr.mxu1 %v272_v8 }
   0xb   :  { %1994 = vmatpush3.msra.mxu1 %v256_v9 }
   0xc   :  { %v64_v5 = vld [vmem:[%s3160_s4] sm:$0xff]  ;;  %v65_v10 = vld [vmem:[%s3160_s4 + $0x8] sm:$0xff] }
   0xd   :  { %1929 = vmatmul.mubr.msk.f32.vlgmr.msra.gmra.mxu0 %vm88_vm0, %v64_v5 }
   0xe   :  { %183 = vmatprep.mubr.f32.mxu0 %v2467_v4 }
   0xf   :  { %27 = vsyncpa [#allocation6], 0  ;;  %1995 = vmatprep.subr.mxu1 %v271_v11  ;;  %v254_v14 = vld [vmem:[%s3138_s7 + $0x60] sm:$0xff]  ;;  %v66_v15 = vld [vmem:[%s3160_s4 + $0x10] sm:$0xff]  ;;  %vm424_vm1 = vcmask 1043456   ;;  %s3161_s5 = sld [smem:[#allocation11_spill]]  ;;  %v78_v52 = vlaneseq }
  0x10   :  { %1996 = vmatpush3.msra.mxu1 %v255_v12  ;;  %v269_v16 = vld [vmem:[%s3138_s7 + $0xd8] sm:$0xff]  ;;  %v268_v18 = vld [vmem:[%s3138_s7 + $0xd0] sm:$0xff]  ;;  %v68_v21 = vld [vmem:[%s3160_s4 + $0x20] sm:$0xff]  ;;  %vm399_vm2 = vcmask 31744   ;;  %vm533_vm3 = vcmask 261120   ;;  %vm2468_vm4 = vmmov 0  }
  0x11   :  { %1930 = vmatmul.mubr.msk.f32.gmra.mxu0 %vm88_vm0, %v65_v10  ;;  %1997 = vmatprep.subr.mxu1 %v270_v13  ;;  %v253_v17 = vld [vmem:[%s3138_s7 + $0x58] sm:$0xff]  ;;  %v252_v19 = vld [vmem:[%s3138_s7 + $0x50] sm:$0xff]  ;;  %v69_v22 = vld [vmem:[%s3160_s4 + $0x28] sm:$0xff]  ;;  %v79_v53 = vshrl.u32 %v78_v52, 7  ;;  %s3163_s0 = sld [smem:[#allocation12_spill]]  ;;  %s2471_s3 = smov 64  }
  0x12   :  { %189 = vmatprep.mubr.f32.mxu0 %v2467_v4  ;;  %1998 = vmatpush3.msra.mxu1 %v254_v14  ;;  %v67_v20 = vld [vmem:[%s3160_s4 + $0x18] sm:$0xff]  ;;  %v70_v23 = vld [vmem:[%s3160_s4 + $0x30] sm:$0xff]  ;;  %v267_v25 = vld [vmem:[%s3138_s7 + $0xc8] sm:$0xff]  ;;  %s3164_s22 = sld [smem:[#allocation14_spill]] }
  0x13   :  { %1999 = vmatprep.subr.mxu1 %v269_v16  ;;  %v71_v24 = vld [vmem:[%s3160_s4 + $0x38] sm:$0xff]  ;;  %v251_v26 = vld [vmem:[%s3138_s7 + $0x48] sm:$0xff]  ;;  %v266_v27 = vld [vmem:[%s3138_s7 + $0xc0] sm:$0xff]  ;;  %v80_v54 = vsub.s32 0, %v79_v53  ;;  %v84_v56 = vsub.s32 1, %v79_v53  ;;  %s3162_s4 = sld [smem:[#allocation13_spill]] }
  0x14   :  { %2000 = vmatpush3.msra.mxu1 %v253_v17  ;;  %v250_v28 = vld [vmem:[%s3138_s7 + $0x40] sm:$0xff]  ;;  %v265_v29 = vld [vmem:[%s3138_s7 + $0xb8] sm:$0xff]  ;;  %v264_v31 = vld [vmem:[%s3138_s7 + $0xb0] sm:$0xff] }
  0x15   :  { %1931 = vmatmul.mubr.msk.f32.gmra.mxu0 %vm88_vm0, %v66_v15  ;;  %2001 = vmatprep.subr.mxu1 %v268_v18  ;;  %v249_v30 = vld [vmem:[%s3138_s7 + $0x38] sm:$0xff]  ;;  %v248_v32 = vld [vmem:[%s3138_s7 + $0x30] sm:$0xff]  ;;  %v263_v33 = vld [vmem:[%s3138_s7 + $0xa8] sm:$0xff] }
  0x16   :  { %195 = vmatprep.mubr.f32.mxu0 %v2467_v4  ;;  %2002 = vmatpush3.msra.mxu1 %v252_v19  ;;  %v247_v34 = vld [vmem:[%s3138_s7 + $0x28] sm:$0xff]  ;;  %v262_v35 = vld [vmem:[%s3138_s7 + $0xa0] sm:$0xff]  ;;  %v261_v37 = vld [vmem:[%s3138_s7 + $0x98] sm:$0xff] }
  0x17   :  { %2003 = vmatprep.subr.mxu1 %v267_v25  ;;  %v246_v36 = vld [vmem:[%s3138_s7 + $0x20] sm:$0xff]  ;;  %v245_v38 = vld [vmem:[%s3138_s7 + $0x18] sm:$0xff]  ;;  %v260_v39 = vld [vmem:[%s3138_s7 + $0x90] sm:$0xff] }
  0x18   :  { %2004 = vmatpush3.msra.mxu1 %v251_v26  ;;  %v244_v40 = vld [vmem:[%s3138_s7 + $0x10] sm:$0xff]  ;;  %v259_v41 = vld [vmem:[%s3138_s7 + $0x88] sm:$0xff]  ;;  %v258_v43 = vld [vmem:[%s3138_s7 + $0x80] sm:$0xff] }
  0x19   :  { %1932 = vmatmul.mubr.msk.f32.gmra.mxu0 %vm88_vm0, %v67_v20  ;;  %2005 = vmatprep.subr.mxu1 %v266_v27  ;;  %v243_v42 = vld [vmem:[%s3138_s7 + $0x8] sm:$0xff]  ;;  %v242_v44 = vld [vmem:[%s3138_s7] sm:$0xff]  ;;  %v389_v48 = vld [vmem:[%s3140_s9 + $0x18] sm:$0xff]  ;;  %s2470_s7 = smov 32  }
  0x1a   :  { %201 = vmatprep.mubr.f32.mxu0 %v2467_v4  ;;  %2006 = vmatpush3.msra.mxu1 %v250_v28  ;;  %v398_v45 = vld [vmem:[%s3141_s10] sm:$0xf]  ;;  %v391_v47 = vld [vmem:[%s3161_s5 + $0x8] sm:$0xff]  ;;  %v392_v49 = vld [vmem:[%s3161_s5 + $0x10] sm:$0xff] }
  0x1b   :  { %2007 = vmatprep.subr.mxu1 %v265_v29  ;;  %v390_v46 = vld [vmem:[%s3161_s5] sm:$0xff]  ;;  %2132 = vmatprep.subr.msk.mxu0 %vm424_vm1, %v398_v45  ;;  %v388_v50 = vld [vmem:[%s3140_s9 + $0x10] sm:$0xff]  ;;  %v393_v51 = vld [vmem:[%s3161_s5 + $0x18] sm:$0xff] }
  0x1c   :  { %2008 = vmatpush3.msra.mxu1 %v249_v30  ;;  %2133 = vmatpush3.msk.msra.mxu0 %vm424_vm1, %v398_v45  ;;  %v76_v55 = vld [vmem:[%s3137_s6] sm:$0x3]  ;;  %v2776_v16 = vld [vmem:[%s3143_s12 + $0x18] sm:$0xff]  ;;  %v2782_v20 = vld [vmem:[%s3143_s12 + $0x10] sm:$0xff] }
  0x1d   :  { %1933 = vmatmul.mubr.msk.f32.gmra.mxu0 %vm88_vm0, %v68_v21  ;;  %2009 = vmatprep.subr.mxu1 %v264_v31  ;;  %v2760_v57 = vrot.slane %v76_v55, %v80_v54  ;;  %v2762_v58 = vrot.slane %v76_v55, %v84_v56  ;;  %v386_v52 = vld [vmem:[%s3140_s9] sm:$0xff] }
  0x1e   :  { %207 = vmatprep.mubr.f32.mxu0 %v2467_v4  ;;  %2010 = vmatpush3.msra.mxu1 %v248_v32  ;;  %v2827_v53 = vld [vmem:[%s3143_s12] sm:$0xff] }
  0x1f   :  { %2011 = vmatprep.subr.mxu1 %v263_v33  ;;  %2146 = vmatprep.subr.mxu0 %v389_v48  ;;  %v753_v54 = vld [vmem:[%s3162_s4] sm:$0xff] }
  0x20   :  { %2012 = vmatpush3.msra.mxu1 %v247_v34  ;;  %v663_v55 = vld [vmem:[%s3163_s0] sm:$0xff] }
  0x21   :  { %1934 = vmatmul.mubr.msk.f32.gmra.mxu0 %vm88_vm0, %v69_v22  ;;  %2013 = vmatprep.subr.mxu1 %v262_v35  ;;  %v754_v56 = vld [vmem:[%s3164_s22] sm:$0xff] }
  0x22   :  { %213 = vmatprep.mubr.f32.mxu0 %v2467_v4  ;;  %2014 = vmatpush3.msra.mxu1 %v246_v36 }
  0x23   :  { %2015 = vmatprep.subr.mxu1 %v261_v37  ;;  %837 = vrot.lane.b32.xlu1 %v754_v56, %s2470_s7 }
  0x24   :  { %2016 = vmatpush3.msra.mxu1 %v245_v38 }
  0x25   :  { %1935 = vmatmul.mubr.msk.f32.gmra.mxu0 %vm88_vm0, %v70_v23  ;;  %2017 = vmatprep.subr.mxu1 %v260_v39 }
  0x26   :  { %219 = vmatprep.mubr.f32.mxu0 %v2467_v4  ;;  %2018 = vmatpush3.msra.mxu1 %v244_v40 }
  0x27   :  { %2019 = vmatprep.subr.mxu1 %v259_v41 }
  0x28   :  { %2020 = vmatpush3.msra.mxu1 %v243_v42 }
  0x29   :  { %1936 = vmatmul.mubr.msk.f32.gmra.mxu0 %vm88_vm0, %v71_v24  ;;  %2021 = vmatprep.subr.mxu1 %v258_v43 }
  0x2a   :  { %2022 = vmatpush3.msra.mxu1 %v242_v44  ;;  %2134 = vmatprep.mubr.msk.f32.mxu0 %vm399_vm2, %v390_v46  ;;  %v394_v46 = vld [vmem:[%s3161_s5 + $0x20] sm:$0xff] }
  0x2b   :  { %2166 = vmatprep.subr.mxu1 %v2467_v4 }
  0x2d   :  { %2135 = vmatmul.mubr.msk.f32.vlgmr.msra.gmra.mxu0 %vm399_vm2, %v391_v47  ;;  %v395_v47 = vld [vmem:[%s3161_s5 + $0x28] sm:$0xff] }
  0x2e   :  { %2147 = vmatpush3.msra.mxu0 %v389_v48  ;;  %2137 = vmatprep.mubr.msk.f32.mxu0 %vm399_vm2, %v392_v49  ;;  %v396_v48 = vld [vmem:[%s3161_s5 + $0x30] sm:$0xff]  ;;  %v397_v49 = vld [vmem:[%s3161_s5 + $0x38] sm:$0xff] }
  0x2f   :  { %2148 = vmatprep.subr.mxu0 %v388_v50 }
  0x30   :  { %2149 = vmatpush3.msra.mxu0 %v388_v50  ;;  %v387_v50 = vld [vmem:[%s3140_s9 + $0x8] sm:$0xff] }
  0x31   :  { %2138 = vmatmul.mubr.msk.f32.gmra.mxu0 %vm399_vm2, %v393_v51  ;;  %v2815_v51 = vld [vmem:[%s3143_s12 + $0x8] sm:$0xff]  ;;  %2150 = vmatprep.subr.mxu0 %v387_v50 }
  0x32   :  { %2140 = vmatprep.mubr.msk.f32.mxu0 %vm399_vm2, %v394_v46  ;;  %2151 = vmatpush3.msra.mxu0 %v387_v50  ;;  %v2896_v46 = vld [vmem:[%s3144_s13] ss:$0 sm:$0xff] }
  0x33   :  { %2152 = vmatprep.subr.mxu0 %v386_v52 }
  0x34   :  { %2153 = vmatpush3.msra.mxu0 %v386_v52 }
  0x35   :  { %2141 = vmatmul.mubr.msk.f32.gmra.mxu0 %vm399_vm2, %v395_v47  ;;  %2177 = vmatprep.subr.mxu0 %v2467_v4 }
  0x36   :  { %2143 = vmatprep.mubr.msk.f32.mxu0 %vm399_vm2, %v396_v48 }
  0x39   :  { %2144 = vmatmul.mubr.msk.f32.gmra.mxu0 %vm399_vm2, %v397_v49 }
  0xcd   :  { %v179_v59 = vpop.f32.mrf.mxu0 }
  0xce   :  { %v180_v60 = vadd.f32 %v179_v59, %v2760_v57  ;;  %v1937_v59 = vld [vmem:[%s3139_s8] ss:$0 sm:$0xff] }
  0xcf   :  { %v181_v61 = vpop.f32.mrf.mxu0 }
  0xd0   :  { %v182_v62 = vadd.f32 %v181_v61, %v2762_v58 }
  0xd1   :  { %v185_v63 = vpop.f32.mrf.mxu0 }
  0xd2   :  { %2307 = vtanh.f32 %v182_v62  ;;  %v186_v0 = vadd.f32 %v185_v63, %v2760_v57 }
  0xd3   :  { %2309 = vtanh.f32 %v180_v60  ;;  %v187_v1 = vpop.f32.mrf.mxu0 }
  0xd4   :  { %v188_v2 = vadd.f32 %v187_v1, %v2762_v58 }
  0xd5   :  { %v191_v3 = vpop.f32.mrf.mxu0 }
  0xd6   :  { %2311 = vtanh.f32 %v188_v2  ;;  %v192_v5 = vadd.f32 %v191_v3, %v2760_v57 }
  0xd7   :  { %2313 = vtanh.f32 %v186_v0  ;;  %v193_v6 = vpop.f32.mrf.mxu0 }
  0xd8   :  { %v194_v7 = vadd.f32 %v193_v6, %v2762_v58  ;;  %2315 = vtanh.f32 %v192_v5 }
  0xd9   :  { %v197_v8 = vpop.f32.mrf.mxu0 }
  0xda   :  { %2317 = vtanh.f32 %v194_v7  ;;  %v198_v9 = vadd.f32 %v197_v8, %v2760_v57 }
  0xdb   :  { %v199_v10 = vpop.f32.mrf.mxu0 }
  0xdc   :  { %v200_v11 = vadd.f32 %v199_v10, %v2762_v58  ;;  %2319 = vtanh.f32 %v198_v9 }
  0xdd   :  { %v203_v12 = vpop.f32.mrf.mxu0 }
  0xde   :  { %2321 = vtanh.f32 %v200_v11  ;;  %v204_v13 = vadd.f32 %v203_v12, %v2760_v57 }
  0xdf   :  { %v2308_v14 = vpop.eup %2307  ;;  %v205_v15 = vpop.f32.mrf.mxu0 }
  0xe0   :  { %v2310_v17 = vpop.eup %2309  ;;  %v206_v18 = vadd.f32 %v205_v15, %v2762_v58  ;;  %345 = vmatprep.mubr.f32.mxu1 %v2308_v14  ;;  %2323 = vtanh.f32 %v204_v13 }
  0xe1   :  { %v209_v19 = vpop.f32.mrf.mxu0  ;;  %346 = vmatmul.mubr.f32.vlgmr.msra.gmra.mxu1 %v2310_v17 }
  0xe2   :  { %2325 = vtanh.f32 %v206_v18  ;;  %v210_v21 = vadd.f32 %v209_v19, %v2760_v57  ;;  %2167 = vmatpush3.msra.mxu1 %v2776_v16 }
  0xe3   :  { %v2312_v22 = vpop.eup %2311  ;;  %v211_v23 = vpop.f32.mrf.mxu0  ;;  %2168 = vmatprep.subr.mxu1 %v2467_v4 }
  0xe4   :  { %v2314_v24 = vpop.eup %2313  ;;  %v212_v25 = vadd.f32 %v211_v23, %v2762_v58  ;;  %350 = vmatprep.mubr.f32.mxu1 %v2312_v22  ;;  %2169 = vmatpush3.msra.mxu1 %v2782_v20  ;;  %2327 = vtanh.f32 %v210_v21 }
  0xe5   :  { %v215_v26 = vpop.f32.mrf.mxu0  ;;  %351 = vmatmul.mubr.f32.gmra.mxu1 %v2314_v24  ;;  %2170 = vmatprep.subr.mxu1 %v2467_v4  ;;  %v2316_v27 = vpop.eup %2315 }
  0xe6   :  { %2329 = vtanh.f32 %v212_v25  ;;  %v216_v28 = vadd.f32 %v215_v26, %v2760_v57  ;;  %2171 = vmatpush3.msra.mxu1 %v2815_v51 }
  0xe7   :  { %v2318_v29 = vpop.eup %2317  ;;  %v217_v30 = vpop.f32.mrf.mxu0  ;;  %2172 = vmatprep.subr.mxu1 %v2467_v4 }
  0xe8   :  { %v218_v31 = vadd.f32 %v217_v30, %v2762_v58  ;;  %355 = vmatprep.mubr.f32.mxu1 %v2318_v29  ;;  %2331 = vtanh.f32 %v216_v28  ;;  %2173 = vmatpush3.msra.mxu1 %v2827_v53 }
  0xe9   :  { %v221_v32 = vpop.f32.mrf.mxu0  ;;  %356 = vmatmul.mubr.f32.gmra.mxu1 %v2316_v27  ;;  %v2320_v33 = vpop.eup %2319  ;;  %2188 = vmatprep.subr.mxu1 %v2467_v4 }
  0xea   :  { %2333 = vtanh.f32 %v218_v31  ;;  %v222_v34 = vadd.f32 %v221_v32, %v2760_v57  ;;  %v2469_v57 = vmov 0  }
  0xeb   :  { %v2322_v35 = vpop.eup %2321  ;;  %v223_v36 = vpop.f32.mrf.mxu0  ;;  %2305 = vset.pattern.permute.xlu0 %v2469_v57  ;;  %2306 = vset.pattern.permute.xlu1 %v2469_v57 }
  0xec   :  { %v224_v37 = vadd.f32 %v223_v36, %v2762_v58  ;;  %360 = vmatprep.mubr.f32.mxu1 %v2322_v35  ;;  %2335 = vtanh.f32 %v222_v34  ;;  %674 = vperm.xlu0 %2305, %v663_v55  }
  0xed   :  { %361 = vmatmul.mubr.f32.gmra.mxu1 %v2320_v33  ;;  %v2324_v38 = vpop.eup %2323  ;;  %v2136_v32 = vpop.f32.mrf.mxu0 }
  0xee   :  { %2337 = vtanh.f32 %v224_v37 }
  0xef   :  { %v2326_v39 = vpop.eup %2325  ;;  %v494_v33 = vpop.f32.mrf.mxu0 }
  0xf0   :  { %365 = vmatprep.mubr.f32.mxu1 %v2326_v39 }
  0xf1   :  { %366 = vmatmul.mubr.f32.gmra.mxu1 %v2324_v38  ;;  %v2328_v40 = vpop.eup %2327  ;;  %v2875_v34 = vpop.f32.mrf.mxu0 }
  0xf3   :  { %v2330_v41 = vpop.eup %2329  ;;  %v2877_v35 = vpop.f32.mrf.mxu0 }
  0xf4   :  { %370 = vmatprep.mubr.f32.mxu1 %v2330_v41 }
  0xf5   :  { %371 = vmatmul.mubr.f32.gmra.mxu1 %v2328_v40  ;;  %v2332_v42 = vpop.eup %2331  ;;  %v2879_v36 = vpop.f32.mrf.mxu0  ;;  %v2890_v40 = vld [vmem:[%s3142_s11] ss:$0 sm:$0xff] }
  0xf7   :  { %v2334_v43 = vpop.eup %2333  ;;  %v2881_v37 = vpop.f32.mrf.mxu0 }
  0xf8   :  { %375 = vmatprep.mubr.f32.mxu1 %v2334_v43 }
  0xf9   :  { %376 = vmatmul.mubr.f32.gmra.mxu1 %v2332_v42  ;;  %v2336_v44 = vpop.eup %2335  ;;  %v2883_v38 = vpop.f32.mrf.mxu0 }
  0xfb   :  { %v2338_v45 = vpop.eup %2337  ;;  %v2885_v39 = vpop.f32.mrf.mxu0 }
  0xfc   :  { %380 = vmatprep.mubr.f32.mxu1 %v2338_v45 }
  0xfd   :  { %381 = vmatmul.mubr.f32.gmra.mxu1 %v2336_v44 }
  0xfe   :  { %2174 = vmatprep.mubr.msk.f32.mxu1 %vm2468_vm4, %v2467_v4 }
 0x101   :  { %2175 = vmatmul.mubr.msk.f32.vlgmr.msra.gmra.mxu1 %vm533_vm3, %v753_v54 }
 0x102   :  { %2189 = vmatpush3.msra.mxu1 %v2776_v16  ;;  %2196 = vmatprep.mubr.msk.f32.mxu1 %vm2468_vm4, %v2467_v4 }
 0x103   :  { %2190 = vmatprep.subr.mxu1 %v2467_v4 }
 0x104   :  { %2191 = vmatpush3.msra.mxu1 %v2782_v20 }
 0x105   :  { %2192 = vmatprep.subr.mxu1 %v2467_v4 }
 0x106   :  { %2193 = vmatpush3.msra.mxu1 %v2815_v51 }
 0x107   :  { %2194 = vmatprep.subr.mxu1 %v2467_v4 }
 0x108   :  { %2195 = vmatpush3.msra.mxu1 %v2827_v53 }
 0x109   :  { %2210 = vmatprep.subr.mxu1 %v2467_v4 }
 0x167   :  { %v675_v41 = vpop.permute.xlu0 %674 }
 0x168   :  { %v718_v43 = vmul.f32 %v2890_v40, %v675_v41 }
 0x1a1   :  { %v2023_v58 = vpop.f32.mrf.mxu1 }
 0x1a3   :  { %v2024_v60 = vpop.f32.mrf.mxu1 }
 0x1a4   :  { %v2025_v61 = vadd.f32 %v2024_v60, %v2023_v58 }
 0x1a5   :  { %v2026_v62 = vpop.f32.mrf.mxu1 }
 0x1a6   :  { %v348_v63 = vadd.f32 %v2025_v61, %v1937_v59 }
 0x1a7   :  { %v2027_v0 = vpop.f32.mrf.mxu1 }
 0x1a8   :  { %v2028_v1 = vadd.f32 %v2027_v0, %v2026_v62  ;;  %2154 = vmatprep.mubr.msk.f32.mxu0 %vm533_vm3, %v348_v63  ;;  %v664_v0 = vld [vmem:[%s3163_s0 + $0x8] sm:$0xff] }
 0x1a9   :  { %v2029_v2 = vpop.f32.mrf.mxu1 }
 0x1aa   :  { %v353_v3 = vadd.f32 %v2028_v1, %v1937_v59 }
 0x1ab   :  { %v2030_v5 = vpop.f32.mrf.mxu1 }
 0x1ac   :  { %v2031_v6 = vadd.f32 %v2030_v5, %v2029_v2  ;;  %2155 = vmatmul.mubr.msk.f32.vlgmr.msra.gmra.mxu0 %vm533_vm3, %v353_v3 }
 0x1ad   :  { %v2032_v7 = vpop.f32.mrf.mxu1  ;;  %2178 = vmatpush3.msra.mxu0 %v2776_v16 }
 0x1ae   :  { %v358_v8 = vadd.f32 %v2031_v6, %v1937_v59  ;;  %2179 = vmatprep.subr.mxu0 %v2467_v4 }
 0x1af   :  { %v2033_v9 = vpop.f32.mrf.mxu1  ;;  %2180 = vmatpush3.msra.mxu0 %v2782_v20 }
 0x1b0   :  { %v2034_v10 = vadd.f32 %v2033_v9, %v2032_v7  ;;  %2157 = vmatprep.mubr.msk.f32.mxu0 %vm533_vm3, %v358_v8  ;;  %2181 = vmatprep.subr.mxu0 %v2467_v4 }
 0x1b1   :  { %v2035_v11 = vpop.f32.mrf.mxu1  ;;  %2182 = vmatpush3.msra.mxu0 %v2815_v51 }
 0x1b2   :  { %v363_v12 = vadd.f32 %v2034_v10, %v1937_v59  ;;  %2183 = vmatprep.subr.mxu0 %v2467_v4 }
 0x1b3   :  { %v2036_v13 = vpop.f32.mrf.mxu1  ;;  %2184 = vmatpush3.msra.mxu0 %v2827_v53 }
 0x1b4   :  { %v2037_v14 = vadd.f32 %v2036_v13, %v2035_v11  ;;  %2158 = vmatmul.mubr.msk.f32.gmra.mxu0 %vm533_vm3, %v363_v12  ;;  %2199 = vmatprep.subr.mxu0 %v2467_v4 }
 0x1b5   :  { %v2038_v15 = vpop.f32.mrf.mxu1 }
 0x1b6   :  { %v368_v17 = vadd.f32 %v2037_v14, %v1937_v59 }
 0x1b7   :  { %v2039_v18 = vpop.f32.mrf.mxu1 }
 0x1b8   :  { %v2040_v19 = vadd.f32 %v2039_v18, %v2038_v15  ;;  %2160 = vmatprep.mubr.msk.f32.mxu0 %vm533_vm3, %v368_v17 }
 0x1b9   :  { %v2041_v21 = vpop.f32.mrf.mxu1 }
 0x1ba   :  { %v373_v22 = vadd.f32 %v2040_v19, %v1937_v59 }
 0x1bb   :  { %v2042_v23 = vpop.f32.mrf.mxu1 }
 0x1bc   :  { %v2043_v24 = vadd.f32 %v2042_v23, %v2041_v21  ;;  %2161 = vmatmul.mubr.msk.f32.gmra.mxu0 %vm533_vm3, %v373_v22 }
 0x1bd   :  { %v2044_v25 = vpop.f32.mrf.mxu1 }
 0x1be   :  { %v378_v26 = vadd.f32 %v2043_v24, %v1937_v59 }
 0x1bf   :  { %v2045_v27 = vpop.f32.mrf.mxu1 }
 0x1c0   :  { %v2046_v28 = vadd.f32 %v2045_v27, %v2044_v25  ;;  %2163 = vmatprep.mubr.msk.f32.mxu0 %vm533_vm3, %v378_v26 }
 0x1c1   :  { %v824_v30 = vpop.f32.mrf.mxu1 }
 0x1c2   :  { %v383_v29 = vadd.f32 %v2046_v28, %v1937_v59  ;;  %v838_v59 = vpop.permute.xlu1 %837 }
 0x1c3   :  { %v2176_v31 = vpop.f32.mrf.mxu1 }
 0x1c4   :  { %2164 = vmatmul.mubr.msk.f32.gmra.mxu0 %vm533_vm3, %v383_v29 }
 0x1c5   :  { %2185 = vmatprep.mubr.msk.f32.mxu0 %vm2468_vm4, %v2467_v4 }
 0x26c   :  { %v2156_v42 = vpop.f32.mrf.mxu0 }
 0x26d   :  { %v630_v11 = vadd.f32 %v2156_v42, %v2136_v32  ;;  %v665_v32 = vld [vmem:[%s3163_s0 + $0x10] sm:$0xff] }
 0x26e   :  { %v624_v44 = vpop.f32.mrf.mxu0 }
 0x26f   :  { %v625_v45 = vadd.f32 %v624_v44, %v494_v33 }
 0x271   :  { %v726_v47 = vadd.f32 %v718_v43, %v625_v45 }
 0x273   :  { %v741_v48 = vadd.f32 %v2896_v46, %v726_v47 }
 0x274   :  { %v2918_v5 = vpop.f32.mrf.mxu0 }
 0x275   :  { %v828_v49 = vadd.f32 %v824_v30, %v741_v48 }
 0x276   :  { %v634_v6 = vpop.f32.mrf.mxu0 }
 0x277   :  { %2339 = vtanh.f32 %v828_v49  ;;  %v1958_v52 = vmul.f32 -1.442695, %v828_v49  ;;  %v635_v45 = vadd.f32 %v634_v6, %v2877_v35 }
 0x279   :  { %2341 = vpow2.f32 %v1958_v52 }
 0x27c   :  { %v2920_v7 = vpop.f32.mrf.mxu0 }
 0x27e   :  { %v2923_v10 = vpop.f32.mrf.mxu0 }
 0x284   :  { %v2340_v50 = vpop.eup %2339  ;;  %v2925_v12 = vpop.f32.mrf.mxu0 }
 0x285   :  { %842 = vrot.lane.b32.xlu0 %v2340_v50, %s2470_s7 }
 0x286   :  { %v2342_v54 = vpop.eup %2341  ;;  %v2927_v14 = vpop.f32.mrf.mxu0 }
 0x287   :  { %v832_v55 = vadd.f32 1.0, %v2342_v54 }
 0x289   :  { %2343 = vrcp.f32 %v832_v55 }
 0x296   :  { %v2344_v56 = vpop.eup %2343 }
 0x297   :  { %v840_v60 = vmul.f32 %v2344_v56, %v838_v59 }
 0x2f7   :  { %v843_v57 = vpop.permute.xlu0 %842 }
 0x2f8   :  { %v845_v58 = vmul.f32 %v2344_v56, %v843_v57 }
 0x2fa   :  { %847 = vrot.lane.b32.xlu1 %v845_v58, %s2470_s7 }
 0x36c   :  { %v848_v61 = vpop.permute.xlu1 %847 }
 0x36d   :  { %v850_v62 = vadd.f32 %v848_v61, %v840_v60 }
 0x36f   :  { %2345 = vtanh.f32 %v850_v62 }
 0x37c   :  { %v2346_v63 = vpop.eup %2345 }
 0x37d   :  { %853 = vrot.lane.b32.xlu0 %v2346_v63, %s2470_s7 }
 0x381   :  { %679 = vperm.xlu0 %2305, %v664_v0   ;;  %v666_v0 = vld [vmem:[%s3163_s0 + $0x18] sm:$0xff] }
 0x3ef   :  { %v854_v1 = vpop.permute.xlu0 %853 }
 0x3f0   :  { %v856_v2 = vmul.f32 %v2344_v56, %v854_v1 }
 0x3f2   :  { %858 = vrot.lane.b32.xlu1 %v856_v2, %s2471_s3 }
 0x3fc   :  { %v680_v8 = vpop.permute.xlu0 %679 }
 0x3fd   :  { %v719_v9 = vmul.f32 %v2890_v40, %v680_v8 }
 0x3ff   :  { %v727_v13 = vadd.f32 %v719_v9, %v630_v11  ;;  %v640_v9 = vadd.f32 %v2918_v5, %v2875_v34 }
 0x401   :  { %v742_v15 = vadd.f32 %v2896_v46, %v727_v13 }
 0x464   :  { %v859_v3 = vpop.permute.xlu1 %858 }
 0x465   :  { %861 = vst.msk [vmem:[#allocation2] sm:$0xff] %vm533_vm3, %v859_v3  ;;  %2186 = vmatmul.mubr.msk.f32.vlgmr.msra.gmra.mxu0 %vm533_vm3, %v859_v3 }
 0x466   :  { %2200 = vmatpush3.msra.mxu0 %v2776_v16  ;;  %2207 = vmatprep.mubr.msk.f32.mxu0 %vm2468_vm4, %v2467_v4 }
 0x467   :  { %2201 = vmatprep.subr.mxu0 %v2467_v4 }
 0x468   :  { %2202 = vmatpush3.msra.mxu0 %v2782_v20 }
 0x469   :  { %2203 = vmatprep.subr.mxu0 %v2467_v4 }
 0x46a   :  { %2204 = vmatpush3.msra.mxu0 %v2815_v51 }
 0x46b   :  { %2205 = vmatprep.subr.mxu0 %v2467_v4 }
 0x46c   :  { %2206 = vmatpush3.msra.mxu0 %v2827_v53 }
 0x46d   :  { %2221 = vmatprep.subr.mxu0 %v2467_v4 }
 0x525   :  { %v930_v17 = vpop.f32.mrf.mxu0 }
 0x526   :  { %v934_v18 = vadd.f32 %v930_v17, %v742_v15 }
 0x527   :  { %v2187_v19 = vpop.f32.mrf.mxu0 }
 0x528   :  { %2347 = vtanh.f32 %v934_v18  ;;  %v1960_v22 = vmul.f32 -1.442695, %v934_v18 }
 0x52a   :  { %2349 = vpow2.f32 %v1960_v22 }
 0x535   :  { %v2348_v21 = vpop.eup %2347 }
 0x536   :  { %944 = vrot.lane.b32.xlu1 %v2348_v21, %s2470_s7 }
 0x537   :  { %v2350_v23 = vpop.eup %2349 }
 0x538   :  { %v938_v24 = vadd.f32 1.0, %v2350_v23 }
 0x53a   :  { %2351 = vrcp.f32 %v938_v24 }
 0x547   :  { %v2352_v25 = vpop.eup %2351 }
 0x548   :  { %v942_v28 = vmul.f32 %v2352_v25, %v850_v62 }
 0x5a8   :  { %v945_v26 = vpop.permute.xlu1 %944 }
 0x5a9   :  { %v947_v27 = vmul.f32 %v2352_v25, %v945_v26 }
 0x5ab   :  { %949 = vrot.lane.b32.xlu0 %v947_v27, %s2470_s7 }
 0x61d   :  { %v950_v29 = vpop.permute.xlu0 %949 }
 0x61e   :  { %v952_v30 = vadd.f32 %v950_v29, %v942_v28  ;;  %v667_v29 = vld [vmem:[%s3163_s0 + $0x20] sm:$0xff] }
 0x620   :  { %2353 = vtanh.f32 %v952_v30 }
 0x62d   :  { %v2354_v31 = vpop.eup %2353 }
 0x62e   :  { %955 = vrot.lane.b32.xlu1 %v2354_v31, %s2470_s7 }
 0x632   :  { %684 = vperm.xlu1 %2306, %v665_v32  }
 0x6a0   :  { %v956_v33 = vpop.permute.xlu1 %955 }
 0x6a1   :  { %v958_v41 = vmul.f32 %v2352_v25, %v956_v33 }
 0x6a3   :  { %960 = vrot.lane.b32.xlu0 %v958_v41, %s2471_s3 }
 0x6ad   :  { %v685_v43 = vpop.permute.xlu1 %684 }
 0x6ae   :  { %v720_v44 = vmul.f32 %v2890_v40, %v685_v43 }
 0x6b0   :  { %v728_v47 = vadd.f32 %v720_v44, %v635_v45 }
 0x6b2   :  { %v743_v48 = vadd.f32 %v2896_v46, %v728_v47 }
 0x715   :  { %v961_v42 = vpop.permute.xlu0 %960 }
 0x716   :  { %963 = vst.msk [vmem:[#allocation2 + $0x8] sm:$0xff] %vm533_vm3, %v961_v42  ;;  %2197 = vmatmul.mubr.msk.f32.vlgmr.msra.gmra.mxu1 %vm533_vm3, %v961_v42  ;;  %v645_v42 = vadd.f32 %v2923_v10, %v2881_v37 }
 0x717   :  { %2211 = vmatpush3.msra.mxu1 %v2776_v16  ;;  %2218 = vmatprep.mubr.msk.f32.mxu1 %vm2468_vm4, %v2467_v4 }
 0x718   :  { %2212 = vmatprep.subr.mxu1 %v2467_v4 }
 0x719   :  { %2213 = vmatpush3.msra.mxu1 %v2782_v20 }
 0x71a   :  { %2214 = vmatprep.subr.mxu1 %v2467_v4 }
 0x71b   :  { %2215 = vmatpush3.msra.mxu1 %v2815_v51 }
 0x71c   :  { %2216 = vmatprep.subr.mxu1 %v2467_v4 }
 0x71d   :  { %2217 = vmatpush3.msra.mxu1 %v2827_v53 }
 0x71e   :  { %2232 = vmatprep.subr.mxu1 %v2467_v4 }
 0x7d6   :  { %v1032_v49 = vpop.f32.mrf.mxu1 }
 0x7d7   :  { %v1036_v50 = vadd.f32 %v1032_v49, %v743_v48 }
 0x7d8   :  { %v2198_v52 = vpop.f32.mrf.mxu1 }
 0x7d9   :  { %2355 = vtanh.f32 %v1036_v50  ;;  %v1962_v55 = vmul.f32 -1.442695, %v1036_v50 }
 0x7db   :  { %2357 = vpow2.f32 %v1962_v55 }
 0x7e6   :  { %v2356_v54 = vpop.eup %2355 }
 0x7e7   :  { %1046 = vrot.lane.b32.xlu0 %v2356_v54, %s2470_s7 }
 0x7e8   :  { %v2358_v56 = vpop.eup %2357 }
 0x7e9   :  { %v1040_v57 = vadd.f32 1.0, %v2358_v56 }
 0x7eb   :  { %2359 = vrcp.f32 %v1040_v57 }
 0x7f8   :  { %v2360_v58 = vpop.eup %2359 }
 0x7f9   :  { %v1044_v35 = vmul.f32 %v2360_v58, %v952_v30 }
 0x859   :  { %v1047_v59 = vpop.permute.xlu0 %1046 }
 0x85a   :  { %v1049_v60 = vmul.f32 %v2360_v58, %v1047_v59 }
 0x85c   :  { %1051 = vrot.lane.b32.xlu1 %v1049_v60, %s2470_s7  ;;  %v668_v60 = vld [vmem:[%s3163_s0 + $0x28] sm:$0xff] }
 0x8ce   :  { %v1052_v61 = vpop.permute.xlu1 %1051 }
 0x8cf   :  { %v1054_v62 = vadd.f32 %v1052_v61, %v1044_v35 }
 0x8d1   :  { %2361 = vtanh.f32 %v1054_v62 }
 0x8de   :  { %v2362_v63 = vpop.eup %2361 }
 0x8df   :  { %1057 = vrot.lane.b32.xlu0 %v2362_v63, %s2470_s7 }
 0x8e3   :  { %689 = vperm.xlu0 %2305, %v666_v0  }
 0x951   :  { %v1058_v1 = vpop.permute.xlu0 %1057 }
 0x952   :  { %v1060_v2 = vmul.f32 %v2360_v58, %v1058_v1 }
 0x954   :  { %1062 = vrot.lane.b32.xlu1 %v1060_v2, %s2471_s3 }
 0x95e   :  { %v690_v6 = vpop.permute.xlu0 %689 }
 0x95f   :  { %v721_v8 = vmul.f32 %v2890_v40, %v690_v6 }
 0x961   :  { %v729_v11 = vadd.f32 %v721_v8, %v640_v9 }
 0x963   :  { %v744_v13 = vadd.f32 %v2896_v46, %v729_v11 }
 0x9c6   :  { %v1063_v3 = vpop.permute.xlu1 %1062 }
 0x9c7   :  { %1065 = vst.msk [vmem:[#allocation2 + $0x10] sm:$0xff] %vm533_vm3, %v1063_v3  ;;  %2208 = vmatmul.mubr.msk.f32.vlgmr.msra.gmra.mxu0 %vm533_vm3, %v1063_v3 }
 0x9c8   :  { %2222 = vmatpush3.msra.mxu0 %v2776_v16  ;;  %2229 = vmatprep.mubr.msk.f32.mxu0 %vm2468_vm4, %v2467_v4 }
 0x9c9   :  { %2223 = vmatprep.subr.mxu0 %v2467_v4 }
 0x9ca   :  { %2224 = vmatpush3.msra.mxu0 %v2782_v20 }
 0x9cb   :  { %2225 = vmatprep.subr.mxu0 %v2467_v4 }
 0x9cc   :  { %2226 = vmatpush3.msra.mxu0 %v2815_v51 }
 0x9cd   :  { %2227 = vmatprep.subr.mxu0 %v2467_v4 }
 0x9ce   :  { %2228 = vmatpush3.msra.mxu0 %v2827_v53 }
 0x9cf   :  { %2243 = vmatprep.subr.mxu0 %v2467_v4 }
 0xa87   :  { %v1134_v15 = vpop.f32.mrf.mxu0 }
 0xa88   :  { %v1138_v17 = vadd.f32 %v1134_v15, %v744_v13 }
 0xa89   :  { %v2209_v18 = vpop.f32.mrf.mxu0 }
 0xa8a   :  { %2363 = vtanh.f32 %v1138_v17  ;;  %v1964_v21 = vmul.f32 -1.442695, %v1138_v17  ;;  %v669_v18 = vld [vmem:[%s3163_s0 + $0x30] sm:$0xff] }
 0xa8c   :  { %2365 = vpow2.f32 %v1964_v21 }
 0xa97   :  { %v2364_v19 = vpop.eup %2363 }
 0xa98   :  { %1148 = vrot.lane.b32.xlu1 %v2364_v19, %s2470_s7  ;;  %v1593_v19 = vld [vmem:[%s3145_s14 + $0x18] sm:$0xff] }
 0xa99   :  { %v2366_v22 = vpop.eup %2365 }
 0xa9a   :  { %v1142_v23 = vadd.f32 1.0, %v2366_v22 }
 0xa9c   :  { %2367 = vrcp.f32 %v1142_v23 }
 0xaa9   :  { %v2368_v24 = vpop.eup %2367 }
 0xaaa   :  { %v1146_v34 = vmul.f32 %v2368_v24, %v1054_v62 }
 0xb0a   :  { %v1149_v25 = vpop.permute.xlu1 %1148 }
 0xb0b   :  { %v1151_v26 = vmul.f32 %v2368_v24, %v1149_v25  ;;  %v1582_v25 = vld [vmem:[#allocation2] sm:$0xff] }
 0xb0d   :  { %1153 = vrot.lane.b32.xlu0 %v1151_v26, %s2470_s7  ;;  %v1591_v26 = vld [vmem:[%s3145_s14 + $0x8] sm:$0xff] }
 0xb7f   :  { %v1154_v5 = vpop.permute.xlu0 %1153 }
 0xb80   :  { %v1156_v27 = vadd.f32 %v1154_v5, %v1146_v34  ;;  %v1590_v34 = vld [vmem:[%s3145_s14] sm:$0xff]  ;;  %v1583_v5 = vld [vmem:[#allocation2 + $0x8] sm:$0xff] }
 0xb82   :  { %2369 = vtanh.f32 %v1156_v27 }
 0xb8f   :  { %v2370_v28 = vpop.eup %2369 }
 0xb90   :  { %1159 = vrot.lane.b32.xlu1 %v2370_v28, %s2470_s7 }
 0xb94   :  { %694 = vperm.xlu1 %2306, %v667_v29  }
 0xc02   :  { %v1160_v30 = vpop.permute.xlu1 %1159 }
 0xc03   :  { %v1162_v31 = vmul.f32 %v2368_v24, %v1160_v30  ;;  %v1592_v24 = vld [vmem:[%s3145_s14 + $0x10] sm:$0xff] }
 0xc05   :  { %1164 = vrot.lane.b32.xlu0 %v1162_v31, %s2471_s3 }
 0xc0f   :  { %v695_v33 = vpop.permute.xlu1 %694 }
 0xc10   :  { %v722_v41 = vmul.f32 %v2890_v40, %v695_v33  ;;  %v655_v33 = vadd.f32 %v2927_v14, %v2885_v39 }
 0xc12   :  { %v730_v43 = vadd.f32 %v722_v41, %v645_v42 }
 0xc14   :  { %v745_v44 = vadd.f32 %v2896_v46, %v730_v43 }
 0xc77   :  { %v1165_v32 = vpop.permute.xlu0 %1164 }
 0xc78   :  { %1167 = vst.msk [vmem:[#allocation2 + $0x18] sm:$0xff] %vm533_vm3, %v1165_v32  ;;  %2219 = vmatmul.mubr.msk.f32.vlgmr.msra.gmra.mxu1 %vm533_vm3, %v1165_v32 }
 0xc79   :  { %2233 = vmatpush3.msra.mxu1 %v2776_v16  ;;  %2240 = vmatprep.mubr.msk.f32.mxu1 %vm2468_vm4, %v2467_v4 }
 0xc7a   :  { %2234 = vmatprep.subr.mxu1 %v2467_v4 }
 0xc7b   :  { %2235 = vmatpush3.msra.mxu1 %v2782_v20 }
 0xc7c   :  { %2236 = vmatprep.subr.mxu1 %v2467_v4 }
 0xc7d   :  { %2237 = vmatpush3.msra.mxu1 %v2815_v51 }
 0xc7e   :  { %2238 = vmatprep.subr.mxu1 %v2467_v4 }
 0xc7f   :  { %2239 = vmatpush3.msra.mxu1 %v2827_v53  ;;  %v1585_v28 = vld [vmem:[#allocation2 + $0x18] sm:$0xff] }
 0xc80   :  { %2254 = vmatprep.subr.mxu1 %v1593_v19 }
 0xd38   :  { %v1236_v45 = vpop.f32.mrf.mxu1 }
 0xd39   :  { %v1240_v47 = vadd.f32 %v1236_v45, %v745_v44 }
 0xd3a   :  { %v2220_v48 = vpop.f32.mrf.mxu1 }
 0xd3b   :  { %2371 = vtanh.f32 %v1240_v47  ;;  %v1966_v50 = vmul.f32 -1.442695, %v1240_v47 }
 0xd3d   :  { %2373 = vpow2.f32 %v1966_v50 }
 0xd48   :  { %v2372_v49 = vpop.eup %2371 }
 0xd49   :  { %1250 = vrot.lane.b32.xlu0 %v2372_v49, %s2470_s7 }
 0xd4a   :  { %v2374_v52 = vpop.eup %2373 }
 0xd4b   :  { %v1244_v54 = vadd.f32 1.0, %v2374_v52 }
 0xd4d   :  { %2375 = vrcp.f32 %v1244_v54 }
 0xd5a   :  { %v2376_v55 = vpop.eup %2375 }
 0xd5b   :  { %v1248_v37 = vmul.f32 %v2376_v55, %v1156_v27  ;;  %v1584_v27 = vld [vmem:[#allocation2 + $0x10] sm:$0xff] }
 0xdbb   :  { %v1251_v56 = vpop.permute.xlu0 %1250 }
 0xdbc   :  { %v1253_v57 = vmul.f32 %v2376_v55, %v1251_v56 }
 0xdbe   :  { %1255 = vrot.lane.b32.xlu1 %v1253_v57, %s2470_s7 }
 0xe30   :  { %v1256_v10 = vpop.permute.xlu1 %1255 }
 0xe31   :  { %v1258_v58 = vadd.f32 %v1256_v10, %v1248_v37  ;;  %v670_v37 = vld [vmem:[%s3163_s0 + $0x38] sm:$0xff] }
 0xe32   :  { %v1741_v10 = vld [vmem:[%s3147_s16 + $0x18] sm:$0xff] }
 0xe33   :  { %2377 = vtanh.f32 %v1258_v58 }
 0xe40   :  { %v2378_v59 = vpop.eup %2377 }
 0xe41   :  { %1261 = vrot.lane.b32.xlu0 %v2378_v59, %s2470_s7 }
 0xe45   :  { %699 = vperm.xlu0 %2305, %v668_v60  }
 0xeb3   :  { %v1262_v35 = vpop.permute.xlu0 %1261 }
 0xeb4   :  { %v1264_v61 = vmul.f32 %v2376_v55, %v1262_v35 }
 0xeb6   :  { %1266 = vrot.lane.b32.xlu1 %v1264_v61, %s2471_s3 }
 0xec0   :  { %v700_v63 = vpop.permute.xlu0 %699 }
 0xec1   :  { %v723_v0 = vmul.f32 %v2890_v40, %v700_v63 }
 0xf28   :  { %v1267_v62 = vpop.permute.xlu1 %1266 }
 0xf29   :  { %1269 = vst.msk [vmem:[#allocation2 + $0x20] sm:$0xff] %vm533_vm3, %v1267_v62  ;;  %2230 = vmatmul.mubr.msk.f32.vlgmr.msra.gmra.mxu0 %vm533_vm3, %v1267_v62  ;;  %v3066_v62 = vld [vmem:[%s3146_s15] ss:$0 sm:$0xff] }
 0xf2a   :  { %2244 = vmatpush3.msra.mxu0 %v2776_v16  ;;  %2251 = vmatprep.mubr.msk.f32.mxu0 %vm2468_vm4, %v2467_v4  ;;  %v650_v16 = vadd.f32 %v2920_v7, %v2879_v36 }
 0xf2b   :  { %2245 = vmatprep.subr.mxu0 %v2467_v4 }
 0xf2c   :  { %2246 = vmatpush3.msra.mxu0 %v2782_v20  ;;  %v731_v1 = vadd.f32 %v723_v0, %v650_v16 }
 0xf2d   :  { %2247 = vmatprep.subr.mxu0 %v2467_v4 }
 0xf2e   :  { %2248 = vmatpush3.msra.mxu0 %v2815_v51  ;;  %v746_v2 = vadd.f32 %v2896_v46, %v731_v1 }
 0xf2f   :  { %2249 = vmatprep.subr.mxu0 %v2467_v4 }
 0xf30   :  { %2250 = vmatpush3.msra.mxu0 %v2827_v53  ;;  %v1586_v29 = vld [vmem:[#allocation2 + $0x20] sm:$0xff] }
 0xf31   :  { %2274 = vmatprep.subr.mxu0 %v1741_v10 }
 0xfe9   :  { %v1338_v3 = vpop.f32.mrf.mxu0 }
 0xfea   :  { %v1342_v6 = vadd.f32 %v1338_v3, %v746_v2  ;;  %v1740_v2 = vld [vmem:[%s3147_s16 + $0x10] sm:$0xff] }
 0xfeb   :  { %v2231_v20 = vpop.f32.mrf.mxu0 }
 0xfec   :  { %2379 = vtanh.f32 %v1342_v6  ;;  %v1968_v51 = vmul.f32 -1.442695, %v1342_v6  ;;  %v1739_v6 = vld [vmem:[%s3147_s16 + $0x8] sm:$0xff] }
 0xfee   :  { %2381 = vpow2.f32 %v1968_v51  ;;  %v1738_v51 = vld [vmem:[%s3147_s16] sm:$0xff] }
 0xff9   :  { %v2380_v8 = vpop.eup %2379 }
 0xffa   :  { %1352 = vrot.lane.b32.xlu1 %v2380_v8, %s2470_s7 }
 0xffb   :  { %v2382_v4 = vpop.eup %2381 }
 0xffc   :  { %v1346_v53 = vadd.f32 1.0, %v2382_v4 }
 0xffe   :  { %2383 = vrcp.f32 %v1346_v53 }
0x100b   :  { %v2384_v9 = vpop.eup %2383 }
0x100c   :  { %v1350_v36 = vmul.f32 %v2384_v9, %v1258_v58 }
0x106c   :  { %v1353_v11 = vpop.permute.xlu1 %1352 }
0x106d   :  { %v1355_v13 = vmul.f32 %v2384_v9, %v1353_v11 }
0x106f   :  { %1357 = vrot.lane.b32.xlu0 %v1355_v13, %s2470_s7 }
0x10e1   :  { %v1358_v7 = vpop.permute.xlu0 %1357 }
0x10e2   :  { %v1360_v15 = vadd.f32 %v1358_v7, %v1350_v36 }
0x10e4   :  { %2385 = vtanh.f32 %v1360_v15 }
0x10f1   :  { %v2386_v17 = vpop.eup %2385 }
0x10f2   :  { %1363 = vrot.lane.b32.xlu1 %v2386_v17, %s2470_s7 }
0x10f6   :  { %704 = vperm.xlu1 %2306, %v669_v18  }
0x1164   :  { %v1364_v21 = vpop.permute.xlu1 %1363 }
0x1165   :  { %v1366_v22 = vmul.f32 %v2384_v9, %v1364_v21 }
0x1167   :  { %1368 = vrot.lane.b32.xlu0 %v1366_v22, %s2471_s3  ;;  %v660_v22 = vadd.f32 %v2925_v12, %v2883_v38 }
0x1171   :  { %v705_v31 = vpop.permute.xlu1 %704 }
0x1172   :  { %v724_v32 = vmul.f32 %v2890_v40, %v705_v31 }
0x1174   :  { %v732_v41 = vadd.f32 %v724_v32, %v655_v33 }
0x1176   :  { %v747_v42 = vadd.f32 %v2896_v46, %v732_v41 }
0x11d9   :  { %v1369_v23 = vpop.permute.xlu0 %1368 }
0x11da   :  { %1371 = vst.msk [vmem:[#allocation2 + $0x28] sm:$0xff] %vm533_vm3, %v1369_v23  ;;  %2241 = vmatmul.mubr.msk.f32.vlgmr.msra.gmra.mxu1 %vm533_vm3, %v1369_v23 }
0x11db   :  { %2255 = vmatpush3.msra.mxu1 %v1593_v19  ;;  %2262 = vmatprep.mubr.msk.f32.mxu1 %vm533_vm3, %v1582_v25 }
0x11dc   :  { %2256 = vmatprep.subr.mxu1 %v1592_v24 }
0x11dd   :  { %2257 = vmatpush3.msra.mxu1 %v1592_v24 }
0x11de   :  { %2258 = vmatprep.subr.mxu1 %v1591_v26 }
0x11df   :  { %2259 = vmatpush3.msra.mxu1 %v1591_v26 }
0x11e0   :  { %2260 = vmatprep.subr.mxu1 %v1590_v34 }
0x11e1   :  { %2261 = vmatpush3.msra.mxu1 %v1590_v34  ;;  %v1587_v30 = vld [vmem:[#allocation2 + $0x28] sm:$0xff] }
0x11e2   :  { %2263 = vmatmul.mubr.msk.f32.vlgmr.msra.gmra.mxu1 %vm533_vm3, %v1583_v5  ;;  %v3099_v5 = vld [vmem:[%s3148_s17] ss:$0 sm:$0xff]  ;;  %s2472_s17 = smov 96  }
0x11e3   :  { %2265 = vmatprep.mubr.msk.f32.mxu1 %vm533_vm3, %v1584_v27 }
0x11e6   :  { %2266 = vmatmul.mubr.msk.f32.gmra.mxu1 %vm533_vm3, %v1585_v28 }
0x11e7   :  { %2268 = vmatprep.mubr.msk.f32.mxu1 %vm533_vm3, %v1586_v29 }
0x11ea   :  { %2269 = vmatmul.mubr.msk.f32.gmra.mxu1 %vm533_vm3, %v1587_v30 }
0x129a   :  { %v1440_v43 = vpop.f32.mrf.mxu1 }
0x129b   :  { %v1444_v44 = vadd.f32 %v1440_v43, %v747_v42 }
0x129c   :  { %v2242_v45 = vpop.f32.mrf.mxu1 }
0x129d   :  { %2387 = vtanh.f32 %v1444_v44  ;;  %v1970_v48 = vmul.f32 -1.442695, %v1444_v44 }
0x129f   :  { %2389 = vpow2.f32 %v1970_v48 }
0x12a2   :  { %v2264_v60 = vpop.f32.mrf.mxu1 }
0x12a3   :  { %v1697_v20 = vadd.f32 %v2264_v60, %v3066_v62 }
0x12a4   :  { %v1691_v35 = vpop.f32.mrf.mxu1 }
0x12a5   :  { %v1692_v63 = vadd.f32 %v3066_v62, %v1691_v35  ;;  %v1731_v53 = vmax.f32 %v1697_v20, 0.0 }
0x12a6   :  { %v2267_v61 = vpop.f32.mrf.mxu1 }
0x12a7   :  { %v1730_v16 = vmax.f32 %v1692_v63, 0.0  ;;  %v1707_v9 = vadd.f32 %v2267_v61, %v3066_v62 }
0x12a8   :  { %v1701_v0 = vpop.f32.mrf.mxu1 }
0x12a9   :  { %v1702_v8 = vadd.f32 %v3066_v62, %v1701_v0  ;;  %v1733_v7 = vmax.f32 %v1707_v9, 0.0 }
0x12aa   :  { %v2388_v47 = vpop.eup %2387  ;;  %v2270_v3 = vpop.f32.mrf.mxu1 }
0x12ab   :  { %1454 = vrot.lane.b32.xlu0 %v2388_v47, %s2470_s7  ;;  %v1732_v11 = vmax.f32 %v1702_v8, 0.0 }
0x12ac   :  { %v2390_v49 = vpop.eup %2389  ;;  %v1711_v4 = vpop.f32.mrf.mxu1 }
0x12ad   :  { %v1448_v50 = vadd.f32 1.0, %v2390_v49  ;;  %v1712_v13 = vadd.f32 %v3066_v62, %v1711_v4 }
0x12af   :  { %2391 = vrcp.f32 %v1448_v50  ;;  %v1734_v17 = vmax.f32 %v1712_v13, 0.0 }
0x12bc   :  { %v2392_v52 = vpop.eup %2391 }
0x12bd   :  { %v1452_v39 = vmul.f32 %v2392_v52, %v1360_v15  ;;  %v1717_v15 = vadd.f32 %v2270_v3, %v3066_v62 }
0x12bf   :  { %v1735_v18 = vmax.f32 %v1717_v15, 0.0 }
0x131d   :  { %v1455_v54 = vpop.permute.xlu0 %1454 }
0x131e   :  { %v1457_v55 = vmul.f32 %v2392_v52, %v1455_v54 }
0x1320   :  { %1459 = vrot.lane.b32.xlu1 %v1457_v55, %s2470_s7 }
0x1392   :  { %v1460_v14 = vpop.permute.xlu1 %1459 }
0x1393   :  { %v3052_v56 = vadd.f32 %v1460_v14, %v1452_v39 }
0x1395   :  { %2393 = vtanh.f32 %v3052_v56 }
0x13a2   :  { %v2394_v57 = vpop.eup %2393 }
0x13a3   :  { %1465 = vrot.lane.b32.xlu0 %v2394_v57, %s2470_s7 }
0x13a7   :  { %709 = vperm.xlu0 %2305, %v670_v37  }
0x1415   :  { %v1466_v58 = vpop.permute.xlu0 %1465 }
0x1416   :  { %v1468_v59 = vmul.f32 %v2392_v52, %v1466_v58 }
0x1418   :  { %1470 = vrot.lane.b32.xlu1 %v1468_v59, %s2471_s3 }
0x1422   :  { %v710_v19 = vpop.permute.xlu0 %709 }
0x1423   :  { %v725_v21 = vmul.f32 %v2890_v40, %v710_v19 }
0x1425   :  { %v733_v23 = vadd.f32 %v725_v21, %v660_v22 }
0x1427   :  { %v748_v24 = vadd.f32 %v2896_v46, %v733_v23 }
0x148a   :  { %v1471_v1 = vpop.permute.xlu1 %1470 }
0x148b   :  { %1473 = vst.msk [vmem:[#allocation2 + $0x30] sm:$0xff] %vm533_vm3, %v1471_v1  ;;  %2252 = vmatmul.mubr.msk.f32.vlgmr.msra.gmra.mxu0 %vm533_vm3, %v1471_v1 }
0x148c   :  { %2275 = vmatpush3.msra.mxu0 %v1741_v10  ;;  %2282 = vmatprep.mubr.msk.f32.mxu0 %vm533_vm3, %v1730_v16 }
0x148d   :  { %2276 = vmatprep.subr.mxu0 %v1740_v2 }
0x148e   :  { %2277 = vmatpush3.msra.mxu0 %v1740_v2 }
0x148f   :  { %2278 = vmatprep.subr.mxu0 %v1739_v6 }
0x1490   :  { %2279 = vmatpush3.msra.mxu0 %v1739_v6 }
0x1491   :  { %2280 = vmatprep.subr.mxu0 %v1738_v51 }
0x1492   :  { %2281 = vmatpush3.msra.mxu0 %v1738_v51  ;;  %v1588_v36 = vld [vmem:[#allocation2 + $0x30] sm:$0xff] }
0x1493   :  { %2283 = vmatmul.mubr.msk.f32.vlgmr.msra.gmra.mxu0 %vm533_vm3, %v1731_v53  ;;  %2271 = vmatprep.mubr.msk.f32.mxu1 %vm533_vm3, %v1588_v36 }
0x1494   :  { %2285 = vmatprep.mubr.msk.f32.mxu0 %vm533_vm3, %v1732_v11 }
0x1497   :  { %2286 = vmatmul.mubr.msk.f32.gmra.mxu0 %vm533_vm3, %v1733_v7 }
0x1498   :  { %2288 = vmatprep.mubr.msk.f32.mxu0 %vm533_vm3, %v1734_v17 }
0x149b   :  { %2289 = vmatmul.mubr.msk.f32.gmra.mxu0 %vm533_vm3, %v1735_v18 }
0x154b   :  { %v1542_v25 = vpop.f32.mrf.mxu0 }
0x154c   :  { %v1546_v26 = vadd.f32 %v1542_v25, %v748_v24 }
0x154d   :  { %v2253_v34 = vpop.f32.mrf.mxu0 }
0x154e   :  { %2395 = vtanh.f32 %v1546_v26  ;;  %v1972_v43 = vmul.f32 -1.442695, %v1546_v26 }
0x1550   :  { %2397 = vpow2.f32 %v1972_v43 }
0x1553   :  { %v2284_v27 = vpop.f32.mrf.mxu0 }
0x1554   :  { %v1845_v28 = vadd.f32 %v2284_v27, %v3099_v5 }
0x1555   :  { %v1839_v29 = vpop.f32.mrf.mxu0 }
0x1556   :  { %1879 = vst [vmem:[#allocation3 + $0x8] sm:$0xff] %v1845_v28  ;;  %v1840_v40 = vadd.f32 %v3099_v5, %v1839_v29 }
0x1557   :  { %v2287_v38 = vpop.f32.mrf.mxu0 }
0x1558   :  { %1878 = vst [vmem:[#allocation3] sm:$0xff] %v1840_v40  ;;  %v1855_v46 = vadd.f32 %v2287_v38, %v3099_v5 }
0x1559   :  { %v1849_v12 = vpop.f32.mrf.mxu0 }
0x155a   :  { %1881 = vst [vmem:[#allocation3 + $0x18] sm:$0xff] %v1855_v46  ;;  %v1850_v30 = vadd.f32 %v3099_v5, %v1849_v12 }
0x155b   :  { %v2396_v31 = vpop.eup %2395  ;;  %v2290_v32 = vpop.f32.mrf.mxu0 }
0x155c   :  { %1880 = vst [vmem:[#allocation3 + $0x10] sm:$0xff] %v1850_v30  ;;  %v1865_v33 = vadd.f32 %v2290_v32, %v3099_v5  ;;  %1556 = vrot.lane.b32.xlu1 %v2396_v31, %s2470_s7 }
0x155d   :  { %v1859_v41 = vpop.f32.mrf.mxu0  ;;  %v2398_v44 = vpop.eup %2397 }
0x155e   :  { %1883 = vst [vmem:[#allocation3 + $0x28] sm:$0xff] %v1865_v33  ;;  %v1860_v42 = vadd.f32 %v3099_v5, %v1859_v41  ;;  %v1550_v45 = vadd.f32 1.0, %v2398_v44 }
0x1560   :  { %1882 = vst [vmem:[#allocation3 + $0x20] sm:$0xff] %v1860_v42  ;;  %2399 = vrcp.f32 %v1550_v45 }
0x156d   :  { %v2400_v47 = vpop.eup %2399 }
0x156e   :  { %v1554_v50 = vmul.f32 %v2400_v47, %v3052_v56 }
0x15ce   :  { %v1557_v48 = vpop.permute.xlu1 %1556 }
0x15cf   :  { %v1559_v49 = vmul.f32 %v2400_v47, %v1557_v48 }
0x15d1   :  { %1561 = vrot.lane.b32.xlu0 %v1559_v49, %s2470_s7 }
0x1643   :  { %v1562_v52 = vpop.permute.xlu0 %1561 }
0x1644   :  { %v1564_v54 = vadd.f32 %v1562_v52, %v1554_v50 }
0x1646   :  { %2401 = vtanh.f32 %v1564_v54 }
0x1653   :  { %v2402_v55 = vpop.eup %2401 }
0x1654   :  { %1567 = vrot.lane.b32.xlu1 %v2402_v55, %s2470_s7  ;;  %s2473_s7 = smov [#allocation5]  }
0x1658   :  { %1578 = vrot.lane.b32.xlu1 %v1564_v54, %s2472_s17 }
0x16c6   :  { %v1568_v39 = vpop.permute.xlu1 %1567 }
0x16c7   :  { %v1570_v14 = vmul.f32 %v2400_v47, %v1568_v39 }
0x16c9   :  { %1572 = vrot.lane.b32.xlu0 %v1570_v14, %s2471_s3  ;;  %s1904_s3 = sshll.u32 %s2473_s7, 4  ;;  %s1905_s3 = int_to_ptr.vmem [resolvable:$true] %s1904_s3 }
0x16ca   :  { %v1579_v57 = vpop.permute.xlu1 %1578  ;;  %s2403_s4 = scalar_lea.vmem %s1905_s3, 128  ;;  %p2408_p1 = scmp.lt.s32.totalorder %s1905_s3, %s1905_s3 }
0x16cb   :  { %1581 = vst.msk [vmem:[#allocation7] sm:$0xff] %vm533_vm3, %v1579_v57  ;;  %p2404_p0 = scmp.ne.s32.totalorder %s1905_s3, %s2403_s4  ;;  %p2409_p2 = scmp.lt.s32.totalorder %s2403_s4, %s2403_s4 }
0x16cd   :  { %p2410_p3 = por %p2409_p2, %p2408_p1 }
0x16cf   :  { %p2411_p4 = pnand %p2410_p3, %p2404_p0 }
0x173b   :  { %v1573_v37 = vpop.permute.xlu0 %1572 }
0x173c   :  { %1575 = vst.msk [vmem:[#allocation2 + $0x38] sm:$0xff] %vm533_vm3, %v1573_v37  ;;  %1576 = vst.msk [vmem:[#allocation5] sm:$0xff] %vm533_vm3, %v1573_v37 }
0x1743   :  { %v1589_v56 = vld [vmem:[#allocation2 + $0x38] sm:$0xff] }
0x1744   :  { %2272 = vmatmul.mubr.msk.f32.gmra.mxu1 %vm533_vm3, %v1589_v56 }
0x1804   :  { %v2273_v10 = vpop.f32.mrf.mxu1 }
0x1805   :  { %v1727_v58 = vadd.f32 %v2273_v10, %v3066_v62 }
0x1806   :  { %v1721_v59 = vpop.f32.mrf.mxu1 }
0x1807   :  { %v1722_v60 = vadd.f32 %v3066_v62, %v1721_v59  ;;  %v1737_v61 = vmax.f32 %v1727_v58, 0.0 }
0x1809   :  { %v1736_v35 = vmax.f32 %v1722_v60, 0.0 }
0x180b   :  { %2291 = vmatprep.mubr.msk.f32.mxu0 %vm533_vm3, %v1736_v35 }
0x180c   :  { %2292 = vmatmul.mubr.msk.f32.gmra.mxu0 %vm533_vm3, %v1737_v61 }
0x180d   :  { %2414 = shalt.err (!%p2411_p4)
}
0x180e   :  { %1907 = dma.vmem_to_hbm [thread:$0]  %s1905_s3, 128, %s3150_s19, [#allocation6]  }
0x180f   :  { %s2474_s21 = smov [#allocation7]  }
0x1810   :  { %s1914_s1 = sshll.u32 %s2474_s21, 4  ;;  %s1915_s1 = int_to_ptr.vmem [resolvable:$true] %s1914_s1 }
0x1811   :  { %s2423_s22 = scalar_lea.vmem %s1915_s1, 128  ;;  %p2428_p6 = scmp.lt.s32.totalorder %s1915_s1, %s1915_s1 }
0x1812   :  { %p2424_p5 = scmp.ne.s32.totalorder %s1915_s1, %s2423_s22  ;;  %p2429_p7 = scmp.lt.s32.totalorder %s2423_s22, %s2423_s22 }
0x1814   :  { %p2430_p8 = por %p2429_p7, %p2428_p6 }
0x1816   :  { %p2431_p9 = pnand %p2430_p8, %p2424_p5 }
0x1818   :  { %2434 = shalt.err (!%p2431_p9)
}
0x1819   :  { %1917 = dma.vmem_to_hbm [thread:$0]  %s1915_s1, 128, %s3151_s20, [#allocation6]  }
0x181a   :  { %s2475_s8 = smov [#allocation3]  }
0x181b   :  { %s1891_s10 = sshll.u32 %s2475_s8, 4  ;;  %s1892_s10 = int_to_ptr.vmem [resolvable:$true] %s1891_s10 }
0x181c   :  { %s2443_s19 = scalar_lea.vmem %s1892_s10, 1024  ;;  %p2448_p11 = scmp.lt.s32.totalorder %s1892_s10, %s1892_s10 }
0x181d   :  { %p2444_p10 = scmp.ne.s32.totalorder %s1892_s10, %s2443_s19  ;;  %p2449_p12 = scmp.lt.s32.totalorder %s2443_s19, %s2443_s19 }
0x181f   :  { %p2450_p13 = por %p2449_p12, %p2448_p11 }
0x1821   :  { %p2451_p0 = pnand %p2450_p13, %p2444_p10 }
0x18cc   :  { %v2293_v62 = vpop.f32.mrf.mxu0 }
0x18cd   :  { %v1875_v63 = vadd.f32 %v2293_v62, %v3099_v5 }
0x18ce   :  { %v1869_v0 = vpop.f32.mrf.mxu0 }
0x18cf   :  { %1885 = vst [vmem:[#allocation3 + $0x38] sm:$0xff] %v1875_v63  ;;  %v1870_v16 = vadd.f32 %v3099_v5, %v1869_v0 }
0x18d1   :  { %1884 = vst [vmem:[#allocation3 + $0x30] sm:$0xff] %v1870_v16 }
0x18d2   :  { %2454 = shalt.err (!%p2451_p0)
}
0x18d3   :  { %s2476_s2 = smov 128   ;;  %s2477_s20 = smov 8  }
0x18d4   :  { %1897 = dma.vmem_to_hbm [thread:$0]  %s1892_s10, 1024, %s3149_s18, [#allocation4], %s2476_s2, %s2476_s2, %s2477_s20  }
0x18d5   :  { %2463 = dma.done.wait [#allocation4], 1024  }
0x18d6   :  { %2464 = vsyncadd [#allocation4], 4294966272 }
0x18d7   :  { %2465 = dma.done.wait [#allocation6], 256  }
0x18d8   :  { %2466 = vsyncadd [#allocation6], 4294967040 }
0x18d9   :  { %1927 = vsyncpa [#allocation4], 1 }
0x18da   :  { %1928 = vsyncpa [#allocation6], 1 }

</bundles_post_ra>
